<compile_context>
chip_gen: v5e
topology: v5e:2x2
jax: 0.10.0
libtpu: 0.0.40
codegen_flags: <defaults>
</compile_context>

<pallas_src>
import functools

import jax
import jax.numpy as jnp
from jax.experimental import pallas as pl
from jax.experimental.pallas import tpu as pltpu


VMEM_LIMIT_BYTES = 48 * 1024 * 1024  # safe on v5e/v6e (128 MiB) and v7x (64 MiB)


def _cparams(n_axes):
    return pltpu.CompilerParams(
        dimension_semantics=("parallel",) * n_axes,
        vmem_limit_bytes=VMEM_LIMIT_BYTES,
    )


def _row_tile(M, target=256):
    """Pick a row tile that divides M (multiple of 8 when possible)."""
    if M <= target:
        return M
    t = target
    while t >= 8:
        if M % t == 0:
            return t
        t //= 2
    return M


# ----------------------------- Pallas kernels ------------------------------

def _matmul_bias_kernel(x_ref, w_ref, b_ref, o_ref):
    # x: (tm, K) f32, w: (K, N) bf16 (pre-transposed), b: (1, N) f32
    x = x_ref[...].astype(jnp.bfloat16)
    y = jnp.dot(x, w_ref[...], preferred_element_type=jnp.float32) + b_ref[...]
    o_ref[...] = y.astype(o_ref.dtype)


def _layernorm_f32(y, g, b):
    mu = jnp.mean(y, axis=-1, keepdims=True)
    var = jnp.mean((y - mu) ** 2, axis=-1, keepdims=True)
    yn = (y - mu) * jax.lax.rsqrt(var + 1e-5)
    return yn * g + b


def _oproj_res_ln_kernel(a_ref, res_ref, w_ref, b_ref, g_ref, beta_ref, o_ref):
    # fused: attention-out @ Wo + bo + residual -> LayerNorm
    a = a_ref[...].astype(jnp.bfloat16)
    y = jnp.dot(a, w_ref[...], preferred_element_type=jnp.float32) + b_ref[...]
    y = y + res_ref[...].astype(jnp.float32)
    o_ref[...] = _layernorm_f32(y, g_ref[...], beta_ref[...]).astype(o_ref.dtype)


def _ffn_res_ln_kernel(x_ref, w1_ref, b1_ref, w2_ref, b2_ref, g_ref, beta_ref,
                       o_ref):
    # fused: relu(x @ W1 + b1) @ W2 + b2 + x -> LayerNorm
    x = x_ref[...].astype(jnp.float32)
    h = jnp.dot(x.astype(jnp.bfloat16), w1_ref[...],
                preferred_element_type=jnp.float32) + b1_ref[...]
    h = jnp.maximum(h, 0.0)
    y = jnp.dot(h.astype(jnp.bfloat16), w2_ref[...],
                preferred_element_type=jnp.float32) + b2_ref[...]
    y = y + x
    o_ref[...] = _layernorm_f32(y, g_ref[...], beta_ref[...]).astype(o_ref.dtype)


def _attention_core(q2, k2, v2, heads, scale, causal):
    # q2: (S, E), k2/v2: (Sk, E) f32 VMEM values.  Heads sliced in-kernel
    # (no HBM head-shuffle copies); causal mask built from iota (no mask DMA).
    S, E = q2.shape
    Sk = k2.shape[0]
    Dh = E // heads
    if causal:
        row = jax.lax.broadcasted_iota(jnp.int32, (S, Sk), 0)
        col = jax.lax.broadcasted_iota(jnp.int32, (S, Sk), 1)
        masked_out = row < col  # hoisted out of the per-head loop
    outs = []
    for h in range(heads):
        lo, hi = h * Dh, (h + 1) * Dh
        qh = q2[:, lo:hi].astype(jnp.bfloat16)
        kh = k2[:, lo:hi].astype(jnp.bfloat16)
        vh = v2[:, lo:hi].astype(jnp.bfloat16)
        s = jax.lax.dot_general(qh, kh, (((1,), (1,)), ((), ())),
                                preferred_element_type=jnp.float32)
        s = s * jnp.float32(scale)
        if causal:
            s = jnp.where(masked_out, jnp.float32(-1e30), s)
        s = s - jnp.max(s, axis=-1, keepdims=True)
        p = jnp.exp(s)
        p = p * pl.reciprocal(jnp.sum(p, axis=-1, keepdims=True), approx=True)
        outs.append(jnp.dot(p.astype(jnp.bfloat16), vh,
                            preferred_element_type=jnp.float32))
    return jnp.concatenate(outs, axis=-1)  # (S, E), lane-dense


def _self_attn_kernel(qkv_ref, o_ref, *, heads, scale, causal):
    # qkv: (1, S, 3E) packed projections from the fused QKV matmul
    qkv = qkv_ref[0]
    E = qkv.shape[-1] // 3
    out = _attention_core(qkv[:, :E], qkv[:, E:2 * E], qkv[:, 2 * E:],
                          heads, scale, causal)
    o_ref[0] = out.astype(o_ref.dtype)


def _cross_attn_kernel(q_ref, kv_ref, o_ref, *, heads, scale):
    # q: (1, S, E); kv: (1, Sk, 2E) packed K/V projections of the encoder output
    q2 = q_ref[0]
    kv = kv_ref[0]
    E = q2.shape[-1]
    out = _attention_core(q2, kv[:, :E], kv[:, E:], heads, scale, False)
    o_ref[0] = out.astype(o_ref.dtype)


def _fc_logsoftmax_kernel(x_ref, w_ref, b_ref, o_ref):
    # fused final Linear + log_softmax over vocab (last dim)
    logits = jnp.dot(x_ref[...].astype(jnp.bfloat16), w_ref[...],
                     preferred_element_type=jnp.float32) + b_ref[...]
    m = jnp.max(logits, axis=-1, keepdims=True)
    s = logits - m
    lse = jnp.log(jnp.sum(jnp.exp(s), axis=-1, keepdims=True))
    o_ref[...] = (s - lse).astype(o_ref.dtype)


# ----------------------------- kernel wrappers ------------------------------

def linear_bias(x, w, b):
    """x: (..., K) f32; w: (K, N) bf16 (pre-transposed); b: (1, N) f32."""
    K = x.shape[-1]
    N = w.shape[1]
    x2 = x.reshape(-1, K)
    M = x2.shape[0]
    tm = _row_tile(M)
    out = pl.pallas_call(
        _matmul_bias_kernel,
        grid=(M // tm,),
        in_specs=[pl.BlockSpec((tm, K), lambda i: (i, 0)),
                  pl.BlockSpec((K, N), lambda i: (0, 0)),
                  pl.BlockSpec((1, N), lambda i: (0, 0))],
        out_specs=pl.BlockSpec((tm, N), lambda i: (i, 0)),
        out_shape=jax.ShapeDtypeStruct((M, N), jnp.float32),
        compiler_params=_cparams(1),
    )(x2, w, b)
    return out.reshape(x.shape[:-1] + (N,))


def oproj_res_ln(att, res, w, b, g, beta):
    B, S, E = att.shape
    a2 = att.reshape(-1, E)
    r2 = res.reshape(-1, E)
    M = a2.shape[0]
    tm = _row_tile(M)
    out = pl.pallas_call(
        _oproj_res_ln_kernel,
        grid=(M // tm,),
        in_specs=[pl.BlockSpec((tm, E), lambda i: (i, 0)),
                  pl.BlockSpec((tm, E), lambda i: (i, 0)),
                  pl.BlockSpec((E, E), lambda i: (0, 0)),
                  pl.BlockSpec((1, E), lambda i: (0, 0)),
                  pl.BlockSpec((1, E), lambda i: (0, 0)),
                  pl.BlockSpec((1, E), lambda i: (0, 0))],
        out_specs=pl.BlockSpec((tm, E), lambda i: (i, 0)),
        out_shape=jax.ShapeDtypeStruct((M, E), jnp.float32),
        compiler_params=_cparams(1),
    )(a2, r2, w, b, g, beta)
    return out.reshape(B, S, E)


def ffn_res_ln(x, w1, b1, w2, b2, g, beta):
    B, S, E = x.shape
    H = w1.shape[1]
    x2 = x.reshape(-1, E)
    M = x2.shape[0]
    tm = _row_tile(M)
    out = pl.pallas_call(
        _ffn_res_ln_kernel,
        grid=(M // tm,),
        in_specs=[pl.BlockSpec((tm, E), lambda i: (i, 0)),
                  pl.BlockSpec((E, H), lambda i: (0, 0)),
                  pl.BlockSpec((1, H), lambda i: (0, 0)),
                  pl.BlockSpec((H, E), lambda i: (0, 0)),
                  pl.BlockSpec((1, E), lambda i: (0, 0)),
                  pl.BlockSpec((1, E), lambda i: (0, 0)),
                  pl.BlockSpec((1, E), lambda i: (0, 0))],
        out_specs=pl.BlockSpec((tm, E), lambda i: (i, 0)),
        out_shape=jax.ShapeDtypeStruct((M, E), jnp.float32),
        compiler_params=_cparams(1),
    )(x2, w1, b1, w2, b2, g, beta)
    return out.reshape(B, S, E)


def self_attention(qkv, heads, causal):
    """qkv: (B, S, 3E) packed projections -> (B, S, E)."""
    B, S, E3 = qkv.shape
    E = E3 // 3
    Dh = E // heads
    return pl.pallas_call(
        functools.partial(_self_attn_kernel, heads=heads,
                          scale=1.0 / float(Dh) ** 0.5, causal=causal),
        grid=(B,),
        in_specs=[pl.BlockSpec((1, S, E3), lambda i: (i, 0, 0))],
        out_specs=pl.BlockSpec((1, S, E), lambda i: (i, 0, 0)),
        out_shape=jax.ShapeDtypeStruct((B, S, E), jnp.float32),
        compiler_params=_cparams(1),
    )(qkv)


def cross_attention(q, kv, heads):
    """q: (B, S, E); kv: (B, Sk, 2E) packed K/V projections -> (B, S, E)."""
    B, S, E = q.shape
    Sk = kv.shape[1]
    Dh = E // heads
    return pl.pallas_call(
        functools.partial(_cross_attn_kernel, heads=heads,
                          scale=1.0 / float(Dh) ** 0.5),
        grid=(B,),
        in_specs=[pl.BlockSpec((1, S, E), lambda i: (i, 0, 0)),
                  pl.BlockSpec((1, Sk, 2 * E), lambda i: (i, 0, 0))],
        out_specs=pl.BlockSpec((1, S, E), lambda i: (i, 0, 0)),
        out_shape=jax.ShapeDtypeStruct((B, S, E), jnp.float32),
        compiler_params=_cparams(1),
    )(q, kv)


def fc_log_softmax(x, w, b):
    """x: (B, S, E); w: (E, V) bf16; b: (1, V) -> (B, S, V) log-probs."""
    B, S, E = x.shape
    V = w.shape[1]
    x2 = x.reshape(-1, E)
    M = x2.shape[0]
    tm = _row_tile(M)
    out = pl.pallas_call(
        _fc_logsoftmax_kernel,
        grid=(M // tm,),
        in_specs=[pl.BlockSpec((tm, E), lambda i: (i, 0)),
                  pl.BlockSpec((E, V), lambda i: (0, 0)),
                  pl.BlockSpec((1, V), lambda i: (0, 0))],
        out_specs=pl.BlockSpec((tm, V), lambda i: (i, 0)),
        out_shape=jax.ShapeDtypeStruct((M, V), jnp.float32),
        compiler_params=_cparams(1),
    )(x2, w, b)
    return out.reshape(B, S, V)


# ----------------------------- model (glue in JAX) --------------------------

def positional_encoding(seq_len, d_model):
    pos = jnp.arange(seq_len, dtype=jnp.float32)[:, None]
    i = jnp.arange(0, d_model, 2, dtype=jnp.float32)
    div = jnp.exp(-jnp.log(10000.0) * i / d_model)
    pe = jnp.zeros((seq_len, d_model), jnp.float32)
    pe = pe.at[:, 0::2].set(jnp.sin(pos * div))
    pe = pe.at[:, 1::2].set(jnp.cos(pos * div))
    return pe


def transformer_block(p, x, heads, *, causal=False, enc_out=None):
    B, S, E = x.shape
    if enc_out is None:
        # fused QKV projection (one matmul), heads split inside attention kernel
        qkv = linear_bias(x, p["wqkv"], p["bqkv"]).reshape(B, S, 3 * E)
        att = self_attention(qkv, heads, causal)
    else:
        q = linear_bias(x, p["wq"], p["bq"])
        kv = linear_bias(enc_out, p["wkv"], p["bkv"])
        att = cross_attention(q, kv, heads)
    # fused: o-proj + residual + LayerNorm
    x1 = oproj_res_ln(att, x, p["wo"], p["bo"], p["ln1_g"], p["ln1_b"])
    # fused: FFN (w1 + ReLU + w2) + residual + LayerNorm
    return ffn_res_ln(x1, p["w1"], p["b1"], p["w2"], p["b2"],
                      p["ln2_g"], p["ln2_b"])


def seq2seq_forward(params, tokens, heads=4):
    B, S = tokens.shape
    E = params["enc_emb"].shape[1]
    pe = positional_encoding(S, E)[None]  # (1, S, E)

    # Encoder: embeddings + PE, depth=2 transformer blocks (no mask)
    h = params["enc_emb"][tokens] + pe
    for p in params["enc_blocks"]:
        h = transformer_block(p, h, heads, causal=False)
    enc_out = h

    # Decoder: embeddings + PE, causal self-attn block, then cross-attn block
    d = params["dec_emb"][tokens] + pe
    d = transformer_block(params["dec_masked"], d, heads, causal=True)
    d = transformer_block(params["dec_cross"], d, heads, causal=False,
                          enc_out=enc_out)

    # Final Linear(embed -> ntokens) + log_softmax(dim=2), fused in one kernel
    return fc_log_softmax(d, params["fc_w"], params["fc_b"])


# ----------------------------- deterministic init ---------------------------

def _linear_init(key, in_dim, out_dim):
    """Weights stored pre-transposed as (K, N) in bf16; bias as (1, N) f32."""
    k1, k2 = jax.random.split(key)
    bound = 1.0 / float(in_dim) ** 0.5
    w = jax.random.uniform(k1, (in_dim, out_dim), jnp.float32, -bound, bound)
    b = jax.random.uniform(k2, (1, out_dim), jnp.float32, -bound, bound)
    return w.astype(jnp.bfloat16), b


def _block_init(key, E):
    ks = jax.random.split(key, 6)
    wq, bq = _linear_init(ks[0], E, E)
    wk, bk = _linear_init(ks[1], E, E)
    wv, bv = _linear_init(ks[2], E, E)
    p = {
        # fused projection weights (concatenated along N at init, once)
        "wqkv": jnp.concatenate([wq, wk, wv], axis=1),
        "bqkv": jnp.concatenate([bq, bk, bv], axis=1),
        "wq": wq, "bq": bq,
        "wkv": jnp.concatenate([wk, wv], axis=1),
        "bkv": jnp.concatenate([bk, bv], axis=1),
    }
    p["wo"], p["bo"] = _linear_init(ks[3], E, E)
    p["w1"], p["b1"] = _linear_init(ks[4], E, 4 * E)
    p["w2"], p["b2"] = _linear_init(ks[5], 4 * E, E)
    p["ln1_g"] = jnp.ones((1, E), jnp.float32)
    p["ln1_b"] = jnp.zeros((1, E), jnp.float32)
    p["ln2_g"] = jnp.ones((1, E), jnp.float32)
    p["ln2_b"] = jnp.zeros((1, E), jnp.float32)
    return p


def init_params(key, ntokens, E):
    ks = jax.random.split(key, 7)
    params = {
        "enc_emb": jax.random.normal(ks[0], (ntokens, E), jnp.float32),
        "dec_emb": jax.random.normal(ks[1], (ntokens, E), jnp.float32),
        "enc_blocks": [_block_init(ks[2], E), _block_init(ks[3], E)],
        "dec_masked": _block_init(ks[4], E),
        "dec_cross": _block_init(ks[5], E),
    }
    params["fc_w"], params["fc_b"] = _linear_init(ks[6], E, ntokens)
    return params


# ----------------------------- main -----------------------------------------

if __name__ == "__main__":
    B, S, E, NTOKENS, HEADS = 2, 8, 32, 64, 4

    key = jax.random.PRNGKey(0)
    params = init_params(key, NTOKENS, E)
    x_tokens = jax.random.randint(jax.random.fold_in(key, 123), (B, S), 0,
                                  NTOKENS, dtype=jnp.int32)

    fwd = jax.jit(functools.partial(seq2seq_forward, heads=HEADS))
    out = fwd(params, x_tokens)
    out = jax.block_until_ready(out)

    assert out.shape == (B, S, NTOKENS)
    # log_softmax sanity: probabilities along vocab axis sum to ~1
    probs_sum = jnp.exp(out).sum(axis=-1)
    assert bool(jnp.all(jnp.abs(probs_sum - 1.0) < 1e-3))
    print("KERNEL_OK")
</pallas_src>

<mosaic_0001>
module attributes {stable_mosaic.version = 11 : i64} {
  func.func @_self_attn_kernel(%arg0: i32, %arg1: memref<1x8x96xf32, #tpu.memory_space<vmem>>, %arg2: memref<1x8x32xf32, #tpu.memory_space<vmem>>) attributes {dimension_semantics = [#tpu.dimension_semantics<parallel>], iteration_bounds = array<i64: 2>, scalar_prefetch = 0 : i64, scratch_operands = 0 : i64, tpu.core_type = #tpu.core_type<tc>, window_params = [{transform_indices = @transform_0, window_bounds = array<i64: 1, 8, 96>}, {transform_indices = @transform_1, window_bounds = array<i64: 1, 8, 32>}]} {
    %c0 = arith.constant 0 : index
    %c0_0 = arith.constant 0 : index
    %c0_1 = arith.constant 0 : index
    %0 = vector.load %arg1[%c0, %c0_0, %c0_1] : memref<1x8x96xf32, #tpu.memory_space<vmem>>, vector<1x8x96xf32>
    %1 = vector.shape_cast %0 : vector<1x8x96xf32> to vector<8x96xf32>
    %2 = vector.extract_strided_slice %1 {offsets = [0, 0], sizes = [8, 32], strides = [1, 1]} : vector<8x96xf32> to vector<8x32xf32>
    %3 = vector.extract_strided_slice %1 {offsets = [0, 32], sizes = [8, 32], strides = [1, 1]} : vector<8x96xf32> to vector<8x32xf32>
    %4 = vector.extract_strided_slice %1 {offsets = [0, 64], sizes = [8, 32], strides = [1, 1]} : vector<8x96xf32> to vector<8x32xf32>
    %5 = vector.extract_strided_slice %2 {offsets = [0, 0], sizes = [8, 8], strides = [1, 1]} : vector<8x32xf32> to vector<8x8xf32>
    %6 = arith.truncf %5 : vector<8x8xf32> to vector<8x8xbf16>
    %7 = vector.extract_strided_slice %3 {offsets = [0, 0], sizes = [8, 8], strides = [1, 1]} : vector<8x32xf32> to vector<8x8xf32>
    %8 = arith.truncf %7 : vector<8x8xf32> to vector<8x8xbf16>
    %9 = vector.extract_strided_slice %4 {offsets = [0, 0], sizes = [8, 8], strides = [1, 1]} : vector<8x32xf32> to vector<8x8xf32>
    %10 = arith.truncf %9 : vector<8x8xf32> to vector<8x8xbf16>
    %cst = arith.constant dense<0.000000e+00> : vector<8x8xf32>
    %11 = tpu.matmul %6, %8, %cst {dimension_numbers = #tpu.dot_dimension_numbers<[1], [1], [0], [0], [0, 0, 1, 0], [], []>} : vector<8x8xbf16>, vector<8x8xbf16>, vector<8x8xf32> -> vector<8x8xf32>
    %cst_2 = arith.constant 0.353553385 : f32
    %12 = vector.broadcast %cst_2 : f32 to vector<8x8xf32>
    %13 = arith.mulf %11, %12 : vector<8x8xf32>
    %cst_3 = arith.constant dense<0xFF800000> : vector<8xf32>
    %14 = vector.multi_reduction <maximumf>, %13, %cst_3 [1] : vector<8x8xf32> to vector<8xf32>
    %15 = vector.shape_cast %14 : vector<8xf32> to vector<8x1xf32>
    %16 = vector.broadcast %15 : vector<8x1xf32> to vector<8x8xf32>
    %17 = arith.subf %13, %16 : vector<8x8xf32>
    %18 = math.exp %17 : vector<8x8xf32>
    %cst_4 = arith.constant dense<0.000000e+00> : vector<8xf32>
    %19 = vector.multi_reduction <add>, %18, %cst_4 [1] : vector<8x8xf32> to vector<8xf32>
    %20 = vector.shape_cast %19 : vector<8xf32> to vector<8x1xf32>
    %21 = tpu.reciprocal %20 {approx = true} : vector<8x1xf32> -> vector<8x1xf32>
    %22 = vector.broadcast %21 : vector<8x1xf32> to vector<8x8xf32>
    %23 = arith.mulf %18, %22 : vector<8x8xf32>
    %24 = arith.truncf %23 : vector<8x8xf32> to vector<8x8xbf16>
    %cst_5 = arith.constant dense<0.000000e+00> : vector<8x8xf32>
    %25 = tpu.matmul %24, %10, %cst_5 {dimension_numbers = #tpu.dot_dimension_numbers<[1], [0], [0], [1], [0, 0, 1, 1], [], []>} : vector<8x8xbf16>, vector<8x8xbf16>, vector<8x8xf32> -> vector<8x8xf32>
    %26 = vector.extract_strided_slice %2 {offsets = [0, 8], sizes = [8, 8], strides = [1, 1]} : vector<8x32xf32> to vector<8x8xf32>
    %27 = arith.truncf %26 : vector<8x8xf32> to vector<8x8xbf16>
    %28 = vector.extract_strided_slice %3 {offsets = [0, 8], sizes = [8, 8], strides = [1, 1]} : vector<8x32xf32> to vector<8x8xf32>
    %29 = arith.truncf %28 : vector<8x8xf32> to vector<8x8xbf16>
    %30 = vector.extract_strided_slice %4 {offsets = [0, 8], sizes = [8, 8], strides = [1, 1]} : vector<8x32xf32> to vector<8x8xf32>
    %31 = arith.truncf %30 : vector<8x8xf32> to vector<8x8xbf16>
    %cst_6 = arith.constant dense<0.000000e+00> : vector<8x8xf32>
    %32 = tpu.matmul %27, %29, %cst_6 {dimension_numbers = #tpu.dot_dimension_numbers<[1], [1], [0], [0], [0, 0, 1, 0], [], []>} : vector<8x8xbf16>, vector<8x8xbf16>, vector<8x8xf32> -> vector<8x8xf32>
    %cst_7 = arith.constant 0.353553385 : f32
    %33 = vector.broadcast %cst_7 : f32 to vector<8x8xf32>
    %34 = arith.mulf %32, %33 : vector<8x8xf32>
    %cst_8 = arith.constant dense<0xFF800000> : vector<8xf32>
    %35 = vector.multi_reduction <maximumf>, %34, %cst_8 [1] : vector<8x8xf32> to vector<8xf32>
    %36 = vector.shape_cast %35 : vector<8xf32> to vector<8x1xf32>
    %37 = vector.broadcast %36 : vector<8x1xf32> to vector<8x8xf32>
    %38 = arith.subf %34, %37 : vector<8x8xf32>
    %39 = math.exp %38 : vector<8x8xf32>
    %cst_9 = arith.constant dense<0.000000e+00> : vector<8xf32>
    %40 = vector.multi_reduction <add>, %39, %cst_9 [1] : vector<8x8xf32> to vector<8xf32>
    %41 = vector.shape_cast %40 : vector<8xf32> to vector<8x1xf32>
    %42 = tpu.reciprocal %41 {approx = true} : vector<8x1xf32> -> vector<8x1xf32>
    %43 = vector.broadcast %42 : vector<8x1xf32> to vector<8x8xf32>
    %44 = arith.mulf %39, %43 : vector<8x8xf32>
    %45 = arith.truncf %44 : vector<8x8xf32> to vector<8x8xbf16>
    %cst_10 = arith.constant dense<0.000000e+00> : vector<8x8xf32>
    %46 = tpu.matmul %45, %31, %cst_10 {dimension_numbers = #tpu.dot_dimension_numbers<[1], [0], [0], [1], [0, 0, 1, 1], [], []>} : vector<8x8xbf16>, vector<8x8xbf16>, vector<8x8xf32> -> vector<8x8xf32>
    %47 = vector.extract_strided_slice %2 {offsets = [0, 16], sizes = [8, 8], strides = [1, 1]} : vector<8x32xf32> to vector<8x8xf32>
    %48 = arith.truncf %47 : vector<8x8xf32> to vector<8x8xbf16>
    %49 = vector.extract_strided_slice %3 {offsets = [0, 16], sizes = [8, 8], strides = [1, 1]} : vector<8x32xf32> to vector<8x8xf32>
    %50 = arith.truncf %49 : vector<8x8xf32> to vector<8x8xbf16>
    %51 = vector.extract_strided_slice %4 {offsets = [0, 16], sizes = [8, 8], strides = [1, 1]} : vector<8x32xf32> to vector<8x8xf32>
    %52 = arith.truncf %51 : vector<8x8xf32> to vector<8x8xbf16>
    %cst_11 = arith.constant dense<0.000000e+00> : vector<8x8xf32>
    %53 = tpu.matmul %48, %50, %cst_11 {dimension_numbers = #tpu.dot_dimension_numbers<[1], [1], [0], [0], [0, 0, 1, 0], [], []>} : vector<8x8xbf16>, vector<8x8xbf16>, vector<8x8xf32> -> vector<8x8xf32>
    %cst_12 = arith.constant 0.353553385 : f32
    %54 = vector.broadcast %cst_12 : f32 to vector<8x8xf32>
    %55 = arith.mulf %53, %54 : vector<8x8xf32>
    %cst_13 = arith.constant dense<0xFF800000> : vector<8xf32>
    %56 = vector.multi_reduction <maximumf>, %55, %cst_13 [1] : vector<8x8xf32> to vector<8xf32>
    %57 = vector.shape_cast %56 : vector<8xf32> to vector<8x1xf32>
    %58 = vector.broadcast %57 : vector<8x1xf32> to vector<8x8xf32>
    %59 = arith.subf %55, %58 : vector<8x8xf32>
    %60 = math.exp %59 : vector<8x8xf32>
    %cst_14 = arith.constant dense<0.000000e+00> : vector<8xf32>
    %61 = vector.multi_reduction <add>, %60, %cst_14 [1] : vector<8x8xf32> to vector<8xf32>
    %62 = vector.shape_cast %61 : vector<8xf32> to vector<8x1xf32>
    %63 = tpu.reciprocal %62 {approx = true} : vector<8x1xf32> -> vector<8x1xf32>
    %64 = vector.broadcast %63 : vector<8x1xf32> to vector<8x8xf32>
    %65 = arith.mulf %60, %64 : vector<8x8xf32>
    %66 = arith.truncf %65 : vector<8x8xf32> to vector<8x8xbf16>
    %cst_15 = arith.constant dense<0.000000e+00> : vector<8x8xf32>
    %67 = tpu.matmul %66, %52, %cst_15 {dimension_numbers = #tpu.dot_dimension_numbers<[1], [0], [0], [1], [0, 0, 1, 1], [], []>} : vector<8x8xbf16>, vector<8x8xbf16>, vector<8x8xf32> -> vector<8x8xf32>
    %68 = vector.extract_strided_slice %2 {offsets = [0, 24], sizes = [8, 8], strides = [1, 1]} : vector<8x32xf32> to vector<8x8xf32>
    %69 = arith.truncf %68 : vector<8x8xf32> to vector<8x8xbf16>
    %70 = vector.extract_strided_slice %3 {offsets = [0, 24], sizes = [8, 8], strides = [1, 1]} : vector<8x32xf32> to vector<8x8xf32>
    %71 = arith.truncf %70 : vector<8x8xf32> to vector<8x8xbf16>
    %72 = vector.extract_strided_slice %4 {offsets = [0, 24], sizes = [8, 8], strides = [1, 1]} : vector<8x32xf32> to vector<8x8xf32>
    %73 = arith.truncf %72 : vector<8x8xf32> to vector<8x8xbf16>
    %cst_16 = arith.constant dense<0.000000e+00> : vector<8x8xf32>
    %74 = tpu.matmul %69, %71, %cst_16 {dimension_numbers = #tpu.dot_dimension_numbers<[1], [1], [0], [0], [0, 0, 1, 0], [], []>} : vector<8x8xbf16>, vector<8x8xbf16>, vector<8x8xf32> -> vector<8x8xf32>
    %cst_17 = arith.constant 0.353553385 : f32
    %75 = vector.broadcast %cst_17 : f32 to vector<8x8xf32>
    %76 = arith.mulf %74, %75 : vector<8x8xf32>
    %cst_18 = arith.constant dense<0xFF800000> : vector<8xf32>
    %77 = vector.multi_reduction <maximumf>, %76, %cst_18 [1] : vector<8x8xf32> to vector<8xf32>
    %78 = vector.shape_cast %77 : vector<8xf32> to vector<8x1xf32>
    %79 = vector.broadcast %78 : vector<8x1xf32> to vector<8x8xf32>
    %80 = arith.subf %76, %79 : vector<8x8xf32>
    %81 = math.exp %80 : vector<8x8xf32>
    %cst_19 = arith.constant dense<0.000000e+00> : vector<8xf32>
    %82 = vector.multi_reduction <add>, %81, %cst_19 [1] : vector<8x8xf32> to vector<8xf32>
    %83 = vector.shape_cast %82 : vector<8xf32> to vector<8x1xf32>
    %84 = tpu.reciprocal %83 {approx = true} : vector<8x1xf32> -> vector<8x1xf32>
    %85 = vector.broadcast %84 : vector<8x1xf32> to vector<8x8xf32>
    %86 = arith.mulf %81, %85 : vector<8x8xf32>
    %87 = arith.truncf %86 : vector<8x8xf32> to vector<8x8xbf16>
    %cst_20 = arith.constant dense<0.000000e+00> : vector<8x8xf32>
    %88 = tpu.matmul %87, %73, %cst_20 {dimension_numbers = #tpu.dot_dimension_numbers<[1], [0], [0], [1], [0, 0, 1, 1], [], []>} : vector<8x8xbf16>, vector<8x8xbf16>, vector<8x8xf32> -> vector<8x8xf32>
    %89 = tpu.concatenate %25, %46, %67, %88 in 1 : vector<8x8xf32>, vector<8x8xf32>, vector<8x8xf32>, vector<8x8xf32> -> vector<8x32xf32>
    %c0_21 = arith.constant 0 : index
    %c0_22 = arith.constant 0 : index
    %c0_23 = arith.constant 0 : index
    %90 = vector.load %arg2[%c0_21, %c0_22, %c0_23] : memref<1x8x32xf32, #tpu.memory_space<vmem>>, vector<1x8x32xf32>
    %91 = vector.shape_cast %90 : vector<1x8x32xf32> to vector<8x32xf32>
    %92 = vector.shape_cast %89 : vector<8x32xf32> to vector<1x8x32xf32>
    tpu.vector_store %arg2[%c0_21, %c0_22, %c0_23], %92 {strides = array<i32>} : memref<1x8x32xf32, #tpu.memory_space<vmem>>, vector<1x8x32xf32>,
    return
  }
  func.func @transform_0(%arg0: i32) -> (i32, i32, i32) {
    %c0_i32 = arith.constant 0 : i32
    %c0_i32_0 = arith.constant 0 : i32
    %c0_i32_1 = arith.constant 0 : i32
    return %arg0, %c0_i32, %c0_i32_0 : i32, i32, i32
  }
  func.func @transform_1(%arg0: i32) -> (i32, i32, i32) {
    %c0_i32 = arith.constant 0 : i32
    %c0_i32_0 = arith.constant 0 : i32
    %c0_i32_1 = arith.constant 0 : i32
    return %arg0, %c0_i32, %c0_i32_0 : i32, i32, i32
  }
}

module attributes {stable_mosaic.version = 11 : i64} {
  func.func @_matmul_bias_kernel(%arg0: i32, %arg1: memref<16x32xf32, #tpu.memory_space<vmem>>, %arg2: memref<32x96xbf16, #tpu.memory_space<vmem>>, %arg3: memref<1x96xf32, #tpu.memory_space<vmem>>, %arg4: memref<16x96xf32, #tpu.memory_space<vmem>>) attributes {dimension_semantics = [#tpu.dimension_semantics<parallel>], iteration_bounds = array<i64: 1>, scalar_prefetch = 0 : i64, scratch_operands = 0 : i64, tpu.core_type = #tpu.core_type<tc>, window_params = [{transform_indices = @transform_0, window_bounds = array<i64: 16, 32>}, {pipeline_mode = #tpu.pipeline_mode<synchronous>, transform_indices = @transform_1, window_bounds = array<i64: 32, 96>}, {pipeline_mode = #tpu.pipeline_mode<synchronous>, transform_indices = @transform_2, window_bounds = array<i64: 1, 96>}, {transform_indices = @transform_3, window_bounds = array<i64: 16, 96>}]} {
    %c0 = arith.constant 0 : index
    %c0_0 = arith.constant 0 : index
    %0 = vector.load %arg1[%c0, %c0_0] : memref<16x32xf32, #tpu.memory_space<vmem>>, vector<16x32xf32>
    %1 = arith.truncf %0 : vector<16x32xf32> to vector<16x32xbf16>
    %c0_1 = arith.constant 0 : index
    %c0_2 = arith.constant 0 : index
    %2 = vector.load %arg2[%c0_1, %c0_2] : memref<32x96xbf16, #tpu.memory_space<vmem>>, vector<32x96xbf16>
    %cst = arith.constant dense<0.000000e+00> : vector<16x96xf32>
    %3 = tpu.matmul %1, %2, %cst {dimension_numbers = #tpu.dot_dimension_numbers<[1], [0], [0], [1], [0, 0, 1, 1], [], []>} : vector<16x32xbf16>, vector<32x96xbf16>, vector<16x96xf32> -> vector<16x96xf32>
    %c0_3 = arith.constant 0 : index
    %c0_4 = arith.constant 0 : index
    %4 = vector.load %arg3[%c0_3, %c0_4] : memref<1x96xf32, #tpu.memory_space<vmem>>, vector<1x96xf32>
    %5 = vector.broadcast %4 : vector<1x96xf32> to vector<16x96xf32>
    %6 = arith.addf %3, %5 : vector<16x96xf32>
    %c0_5 = arith.constant 0 : index
    %c0_6 = arith.constant 0 : index
    %7 = vector.load %arg4[%c0_5, %c0_6] : memref<16x96xf32, #tpu.memory_space<vmem>>, vector<16x96xf32>
    tpu.vector_store %arg4[%c0_5, %c0_6], %6 {strides = array<i32>} : memref<16x96xf32, #tpu.memory_space<vmem>>, vector<16x96xf32>,
    return
  }
  func.func @transform_0(%arg0: i32) -> (i32, i32) {
    %c0_i32 = arith.constant 0 : i32
    %c0_i32_0 = arith.constant 0 : i32
    return %arg0, %c0_i32 : i32, i32
  }
  func.func @transform_1(%arg0: i32) -> (i32, i32) {
    %c0_i32 = arith.constant 0 : i32
    %c0_i32_0 = arith.constant 0 : i32
    %c0_i32_1 = arith.constant 0 : i32
    return %c0_i32, %c0_i32_0 : i32, i32
  }
  func.func @transform_2(%arg0: i32) -> (i32, i32) {
    %c0_i32 = arith.constant 0 : i32
    %c0_i32_0 = arith.constant 0 : i32
    %c0_i32_1 = arith.constant 0 : i32
    return %c0_i32, %c0_i32_0 : i32, i32
  }
  func.func @transform_3(%arg0: i32) -> (i32, i32) {
    %c0_i32 = arith.constant 0 : i32
    %c0_i32_0 = arith.constant 0 : i32
    return %arg0, %c0_i32 : i32, i32
  }
}

module attributes {stable_mosaic.version = 11 : i64} {
  func.func @_oproj_res_ln_kernel(%arg0: i32, %arg1: memref<16x32xf32, #tpu.memory_space<vmem>>, %arg2: memref<16x32xf32, #tpu.memory_space<vmem>>, %arg3: memref<32x32xbf16, #tpu.memory_space<vmem>>, %arg4: memref<1x32xf32, #tpu.memory_space<vmem>>, %arg5: memref<1x32xf32, #tpu.memory_space<vmem>>, %arg6: memref<1x32xf32, #tpu.memory_space<vmem>>, %arg7: memref<16x32xf32, #tpu.memory_space<vmem>>) attributes {dimension_semantics = [#tpu.dimension_semantics<parallel>], iteration_bounds = array<i64: 1>, scalar_prefetch = 0 : i64, scratch_operands = 0 : i64, tpu.core_type = #tpu.core_type<tc>, window_params = [{transform_indices = @transform_0, window_bounds = array<i64: 16, 32>}, {transform_indices = @transform_1, window_bounds = array<i64: 16, 32>}, {pipeline_mode = #tpu.pipeline_mode<synchronous>, transform_indices = @transform_2, window_bounds = array<i64: 32, 32>}, {pipeline_mode = #tpu.pipeline_mode<synchronous>, transform_indices = @transform_3, window_bounds = array<i64: 1, 32>}, {pipeline_mode = #tpu.pipeline_mode<synchronous>, transform_indices = @transform_4, window_bounds = array<i64: 1, 32>}, {pipeline_mode = #tpu.pipeline_mode<synchronous>, transform_indices = @transform_5, window_bounds = array<i64: 1, 32>}, {transform_indices = @transform_6, window_bounds = array<i64: 16, 32>}]} {
    %c0 = arith.constant 0 : index
    %c0_0 = arith.constant 0 : index
    %0 = vector.load %arg1[%c0, %c0_0] : memref<16x32xf32, #tpu.memory_space<vmem>>, vector<16x32xf32>
    %1 = arith.truncf %0 : vector<16x32xf32> to vector<16x32xbf16>
    %c0_1 = arith.constant 0 : index
    %c0_2 = arith.constant 0 : index
    %2 = vector.load %arg3[%c0_1, %c0_2] : memref<32x32xbf16, #tpu.memory_space<vmem>>, vector<32x32xbf16>
    %cst = arith.constant dense<0.000000e+00> : vector<16x32xf32>
    %3 = tpu.matmul %1, %2, %cst {dimension_numbers = #tpu.dot_dimension_numbers<[1], [0], [0], [1], [0, 0, 1, 1], [], []>} : vector<16x32xbf16>, vector<32x32xbf16>, vector<16x32xf32> -> vector<16x32xf32>
    %c0_3 = arith.constant 0 : index
    %c0_4 = arith.constant 0 : index
    %4 = vector.load %arg4[%c0_3, %c0_4] : memref<1x32xf32, #tpu.memory_space<vmem>>, vector<1x32xf32>
    %5 = vector.broadcast %4 : vector<1x32xf32> to vector<16x32xf32>
    %6 = arith.addf %3, %5 : vector<16x32xf32>
    %c0_5 = arith.constant 0 : index
    %c0_6 = arith.constant 0 : index
    %7 = vector.load %arg2[%c0_5, %c0_6] : memref<16x32xf32, #tpu.memory_space<vmem>>, vector<16x32xf32>
    %8 = arith.addf %6, %7 : vector<16x32xf32>
    %c0_7 = arith.constant 0 : index
    %c0_8 = arith.constant 0 : index
    %9 = vector.load %arg5[%c0_7, %c0_8] : memref<1x32xf32, #tpu.memory_space<vmem>>, vector<1x32xf32>
    %c0_9 = arith.constant 0 : index
    %c0_10 = arith.constant 0 : index
    %10 = vector.load %arg6[%c0_9, %c0_10] : memref<1x32xf32, #tpu.memory_space<vmem>>, vector<1x32xf32>
    %cst_11 = arith.constant dense<0.000000e+00> : vector<16xf32>
    %11 = vector.multi_reduction <add>, %8, %cst_11 [1] : vector<16x32xf32> to vector<16xf32>
    %12 = vector.shape_cast %11 : vector<16xf32> to vector<16x1xf32>
    %cst_12 = arith.constant 3.200000e+01 : f32
    %13 = vector.broadcast %cst_12 : f32 to vector<16x1xf32>
    %14 = arith.divf %12, %13 : vector<16x1xf32>
    %15 = vector.broadcast %14 : vector<16x1xf32> to vector<16x32xf32>
    %16 = arith.subf %8, %15 : vector<16x32xf32>
    %17 = arith.mulf %16, %16 : vector<16x32xf32>
    %cst_13 = arith.constant dense<0.000000e+00> : vector<16xf32>
    %18 = vector.multi_reduction <add>, %17, %cst_13 [1] : vector<16x32xf32> to vector<16xf32>
    %19 = vector.shape_cast %18 : vector<16xf32> to vector<16x1xf32>
    %cst_14 = arith.constant 3.200000e+01 : f32
    %20 = vector.broadcast %cst_14 : f32 to vector<16x1xf32>
    %21 = arith.divf %19, %20 : vector<16x1xf32>
    %22 = vector.broadcast %14 : vector<16x1xf32> to vector<16x32xf32>
    %23 = arith.subf %8, %22 : vector<16x32xf32>
    %cst_15 = arith.constant 9.99999974E-6 : f32
    %24 = vector.broadcast %cst_15 : f32 to vector<16x1xf32>
    %25 = arith.addf %21, %24 : vector<16x1xf32>
    %26 = math.rsqrt %25 : vector<16x1xf32>
    %27 = vector.broadcast %26 : vector<16x1xf32> to vector<16x32xf32>
    %28 = arith.mulf %23, %27 : vector<16x32xf32>
    %29 = vector.broadcast %9 : vector<1x32xf32> to vector<16x32xf32>
    %30 = arith.mulf %28, %29 : vector<16x32xf32>
    %31 = vector.broadcast %10 : vector<1x32xf32> to vector<16x32xf32>
    %32 = arith.addf %30, %31 : vector<16x32xf32>
    %c0_16 = arith.constant 0 : index
    %c0_17 = arith.constant 0 : index
    %33 = vector.load %arg7[%c0_16, %c0_17] : memref<16x32xf32, #tpu.memory_space<vmem>>, vector<16x32xf32>
    tpu.vector_store %arg7[%c0_16, %c0_17], %32 {strides = array<i32>} : memref<16x32xf32, #tpu.memory_space<vmem>>, vector<16x32xf32>,
    return
  }
  func.func @transform_0(%arg0: i32) -> (i32, i32) {
    %c0_i32 = arith.constant 0 : i32
    %c0_i32_0 = arith.constant 0 : i32
    return %arg0, %c0_i32 : i32, i32
  }
  func.func @transform_1(%arg0: i32) -> (i32, i32) {
    %c0_i32 = arith.constant 0 : i32
    %c0_i32_0 = arith.constant 0 : i32
    return %arg0, %c0_i32 : i32, i32
  }
  func.func @transform_2(%arg0: i32) -> (i32, i32) {
    %c0_i32 = arith.constant 0 : i32
    %c0_i32_0 = arith.constant 0 : i32
    %c0_i32_1 = arith.constant 0 : i32
    return %c0_i32, %c0_i32_0 : i32, i32
  }
  func.func @transform_3(%arg0: i32) -> (i32, i32) {
    %c0_i32 = arith.constant 0 : i32
    %c0_i32_0 = arith.constant 0 : i32
    %c0_i32_1 = arith.constant 0 : i32
    return %c0_i32, %c0_i32_0 : i32, i32
  }
  func.func @transform_4(%arg0: i32) -> (i32, i32) {
    %c0_i32 = arith.constant 0 : i32
    %c0_i32_0 = arith.constant 0 : i32
    %c0_i32_1 = arith.constant 0 : i32
    return %c0_i32, %c0_i32_0 : i32, i32
  }
  func.func @transform_5(%arg0: i32) -> (i32, i32) {
    %c0_i32 = arith.constant 0 : i32
    %c0_i32_0 = arith.constant 0 : i32
    %c0_i32_1 = arith.constant 0 : i32
    return %c0_i32, %c0_i32_0 : i32, i32
  }
  func.func @transform_6(%arg0: i32) -> (i32, i32) {
    %c0_i32 = arith.constant 0 : i32
    %c0_i32_0 = arith.constant 0 : i32
    return %arg0, %c0_i32 : i32, i32
  }
}

module attributes {stable_mosaic.version = 11 : i64} {
  func.func @_ffn_res_ln_kernel(%arg0: i32, %arg1: memref<16x32xf32, #tpu.memory_space<vmem>>, %arg2: memref<32x128xbf16, #tpu.memory_space<vmem>>, %arg3: memref<1x128xf32, #tpu.memory_space<vmem>>, %arg4: memref<128x32xbf16, #tpu.memory_space<vmem>>, %arg5: memref<1x32xf32, #tpu.memory_space<vmem>>, %arg6: memref<1x32xf32, #tpu.memory_space<vmem>>, %arg7: memref<1x32xf32, #tpu.memory_space<vmem>>, %arg8: memref<16x32xf32, #tpu.memory_space<vmem>>) attributes {dimension_semantics = [#tpu.dimension_semantics<parallel>], iteration_bounds = array<i64: 1>, scalar_prefetch = 0 : i64, scratch_operands = 0 : i64, tpu.core_type = #tpu.core_type<tc>, window_params = [{transform_indices = @transform_0, window_bounds = array<i64: 16, 32>}, {pipeline_mode = #tpu.pipeline_mode<synchronous>, transform_indices = @transform_1, window_bounds = array<i64: 32, 128>}, {pipeline_mode = #tpu.pipeline_mode<synchronous>, transform_indices = @transform_2, window_bounds = array<i64: 1, 128>}, {pipeline_mode = #tpu.pipeline_mode<synchronous>, transform_indices = @transform_3, window_bounds = array<i64: 128, 32>}, {pipeline_mode = #tpu.pipeline_mode<synchronous>, transform_indices = @transform_4, window_bounds = array<i64: 1, 32>}, {pipeline_mode = #tpu.pipeline_mode<synchronous>, transform_indices = @transform_5, window_bounds = array<i64: 1, 32>}, {pipeline_mode = #tpu.pipeline_mode<synchronous>, transform_indices = @transform_6, window_bounds = array<i64: 1, 32>}, {transform_indices = @transform_7, window_bounds = array<i64: 16, 32>}]} {
    %c0 = arith.constant 0 : index
    %c0_0 = arith.constant 0 : index
    %0 = vector.load %arg1[%c0, %c0_0] : memref<16x32xf32, #tpu.memory_space<vmem>>, vector<16x32xf32>
    %1 = arith.truncf %0 : vector<16x32xf32> to vector<16x32xbf16>
    %c0_1 = arith.constant 0 : index
    %c0_2 = arith.constant 0 : index
    %2 = vector.load %arg2[%c0_1, %c0_2] : memref<32x128xbf16, #tpu.memory_space<vmem>>, vector<32x128xbf16>
    %cst = arith.constant dense<0.000000e+00> : vector<16x128xf32>
    %3 = tpu.matmul %1, %2, %cst {dimension_numbers = #tpu.dot_dimension_numbers<[1], [0], [0], [1], [0, 0, 1, 1], [], []>} : vector<16x32xbf16>, vector<32x128xbf16>, vector<16x128xf32> -> vector<16x128xf32>
    %c0_3 = arith.constant 0 : index
    %c0_4 = arith.constant 0 : index
    %4 = vector.load %arg3[%c0_3, %c0_4] : memref<1x128xf32, #tpu.memory_space<vmem>>, vector<1x128xf32>
    %5 = vector.broadcast %4 : vector<1x128xf32> to vector<16x128xf32>
    %6 = arith.addf %3, %5 : vector<16x128xf32>
    %cst_5 = arith.constant 0.000000e+00 : f32
    %7 = vector.broadcast %cst_5 : f32 to vector<16x128xf32>
    %8 = arith.maximumf %6, %7 : vector<16x128xf32>
    %9 = arith.truncf %8 : vector<16x128xf32> to vector<16x128xbf16>
    %c0_6 = arith.constant 0 : index
    %c0_7 = arith.constant 0 : index
    %10 = vector.load %arg4[%c0_6, %c0_7] : memref<128x32xbf16, #tpu.memory_space<vmem>>, vector<128x32xbf16>
    %cst_8 = arith.constant dense<0.000000e+00> : vector<16x32xf32>
    %11 = tpu.matmul %9, %10, %cst_8 {dimension_numbers = #tpu.dot_dimension_numbers<[1], [0], [0], [1], [0, 0, 1, 1], [], []>} : vector<16x128xbf16>, vector<128x32xbf16>, vector<16x32xf32> -> vector<16x32xf32>
    %c0_9 = arith.constant 0 : index
    %c0_10 = arith.constant 0 : index
    %12 = vector.load %arg5[%c0_9, %c0_10] : memref<1x32xf32, #tpu.memory_space<vmem>>, vector<1x32xf32>
    %13 = vector.broadcast %12 : vector<1x32xf32> to vector<16x32xf32>
    %14 = arith.addf %11, %13 : vector<16x32xf32>
    %15 = arith.addf %14, %0 : vector<16x32xf32>
    %c0_11 = arith.constant 0 : index
    %c0_12 = arith.constant 0 : index
    %16 = vector.load %arg6[%c0_11, %c0_12] : memref<1x32xf32, #tpu.memory_space<vmem>>, vector<1x32xf32>
    %c0_13 = arith.constant 0 : index
    %c0_14 = arith.constant 0 : index
    %17 = vector.load %arg7[%c0_13, %c0_14] : memref<1x32xf32, #tpu.memory_space<vmem>>, vector<1x32xf32>
    %cst_15 = arith.constant dense<0.000000e+00> : vector<16xf32>
    %18 = vector.multi_reduction <add>, %15, %cst_15 [1] : vector<16x32xf32> to vector<16xf32>
    %19 = vector.shape_cast %18 : vector<16xf32> to vector<16x1xf32>
    %cst_16 = arith.constant 3.200000e+01 : f32
    %20 = vector.broadcast %cst_16 : f32 to vector<16x1xf32>
    %21 = arith.divf %19, %20 : vector<16x1xf32>
    %22 = vector.broadcast %21 : vector<16x1xf32> to vector<16x32xf32>
    %23 = arith.subf %15, %22 : vector<16x32xf32>
    %24 = arith.mulf %23, %23 : vector<16x32xf32>
    %cst_17 = arith.constant dense<0.000000e+00> : vector<16xf32>
    %25 = vector.multi_reduction <add>, %24, %cst_17 [1] : vector<16x32xf32> to vector<16xf32>
    %26 = vector.shape_cast %25 : vector<16xf32> to vector<16x1xf32>
    %cst_18 = arith.constant 3.200000e+01 : f32
    %27 = vector.broadcast %cst_18 : f32 to vector<16x1xf32>
    %28 = arith.divf %26, %27 : vector<16x1xf32>
    %29 = vector.broadcast %21 : vector<16x1xf32> to vector<16x32xf32>
    %30 = arith.subf %15, %29 : vector<16x32xf32>
    %cst_19 = arith.constant 9.99999974E-6 : f32
    %31 = vector.broadcast %cst_19 : f32 to vector<16x1xf32>
    %32 = arith.addf %28, %31 : vector<16x1xf32>
    %33 = math.rsqrt %32 : vector<16x1xf32>
    %34 = vector.broadcast %33 : vector<16x1xf32> to vector<16x32xf32>
    %35 = arith.mulf %30, %34 : vector<16x32xf32>
    %36 = vector.broadcast %16 : vector<1x32xf32> to vector<16x32xf32>
    %37 = arith.mulf %35, %36 : vector<16x32xf32>
    %38 = vector.broadcast %17 : vector<1x32xf32> to vector<16x32xf32>
    %39 = arith.addf %37, %38 : vector<16x32xf32>
    %c0_20 = arith.constant 0 : index
    %c0_21 = arith.constant 0 : index
    %40 = vector.load %arg8[%c0_20, %c0_21] : memref<16x32xf32, #tpu.memory_space<vmem>>, vector<16x32xf32>
    tpu.vector_store %arg8[%c0_20, %c0_21], %39 {strides = array<i32>} : memref<16x32xf32, #tpu.memory_space<vmem>>, vector<16x32xf32>,
    return
  }
  func.func @transform_0(%arg0: i32) -> (i32, i32) {
    %c0_i32 = arith.constant 0 : i32
    %c0_i32_0 = arith.constant 0 : i32
    return %arg0, %c0_i32 : i32, i32
  }
  func.func @transform_1(%arg0: i32) -> (i32, i32) {
    %c0_i32 = arith.constant 0 : i32
    %c0_i32_0 = arith.constant 0 : i32
    %c0_i32_1 = arith.constant 0 : i32
    return %c0_i32, %c0_i32_0 : i32, i32
  }
  func.func @transform_2(%arg0: i32) -> (i32, i32) {
    %c0_i32 = arith.constant 0 : i32
    %c0_i32_0 = arith.constant 0 : i32
    %c0_i32_1 = arith.constant 0 : i32
    return %c0_i32, %c0_i32_0 : i32, i32
  }
  func.func @transform_3(%arg0: i32) -> (i32, i32) {
    %c0_i32 = arith.constant 0 : i32
    %c0_i32_0 = arith.constant 0 : i32
    %c0_i32_1 = arith.constant 0 : i32
    return %c0_i32, %c0_i32_0 : i32, i32
  }
  func.func @transform_4(%arg0: i32) -> (i32, i32) {
    %c0_i32 = arith.constant 0 : i32
    %c0_i32_0 = arith.constant 0 : i32
    %c0_i32_1 = arith.constant 0 : i32
    return %c0_i32, %c0_i32_0 : i32, i32
  }
  func.func @transform_5(%arg0: i32) -> (i32, i32) {
    %c0_i32 = arith.constant 0 : i32
    %c0_i32_0 = arith.constant 0 : i32
    %c0_i32_1 = arith.constant 0 : i32
    return %c0_i32, %c0_i32_0 : i32, i32
  }
  func.func @transform_6(%arg0: i32) -> (i32, i32) {
    %c0_i32 = arith.constant 0 : i32
    %c0_i32_0 = arith.constant 0 : i32
    %c0_i32_1 = arith.constant 0 : i32
    return %c0_i32, %c0_i32_0 : i32, i32
  }
  func.func @transform_7(%arg0: i32) -> (i32, i32) {
    %c0_i32 = arith.constant 0 : i32
    %c0_i32_0 = arith.constant 0 : i32
    return %arg0, %c0_i32 : i32, i32
  }
}

module attributes {stable_mosaic.version = 11 : i64} {
  func.func @_matmul_bias_kernel(%arg0: i32, %arg1: memref<16x32xf32, #tpu.memory_space<vmem>>, %arg2: memref<32x64xbf16, #tpu.memory_space<vmem>>, %arg3: memref<1x64xf32, #tpu.memory_space<vmem>>, %arg4: memref<16x64xf32, #tpu.memory_space<vmem>>) attributes {dimension_semantics = [#tpu.dimension_semantics<parallel>], iteration_bounds = array<i64: 1>, scalar_prefetch = 0 : i64, scratch_operands = 0 : i64, tpu.core_type = #tpu.core_type<tc>, window_params = [{transform_indices = @transform_0, window_bounds = array<i64: 16, 32>}, {pipeline_mode = #tpu.pipeline_mode<synchronous>, transform_indices = @transform_1, window_bounds = array<i64: 32, 64>}, {pipeline_mode = #tpu.pipeline_mode<synchronous>, transform_indices = @transform_2, window_bounds = array<i64: 1, 64>}, {transform_indices = @transform_3, window_bounds = array<i64: 16, 64>}]} {
    %c0 = arith.constant 0 : index
    %c0_0 = arith.constant 0 : index
    %0 = vector.load %arg1[%c0, %c0_0] : memref<16x32xf32, #tpu.memory_space<vmem>>, vector<16x32xf32>
    %1 = arith.truncf %0 : vector<16x32xf32> to vector<16x32xbf16>
    %c0_1 = arith.constant 0 : index
    %c0_2 = arith.constant 0 : index
    %2 = vector.load %arg2[%c0_1, %c0_2] : memref<32x64xbf16, #tpu.memory_space<vmem>>, vector<32x64xbf16>
    %cst = arith.constant dense<0.000000e+00> : vector<16x64xf32>
    %3 = tpu.matmul %1, %2, %cst {dimension_numbers = #tpu.dot_dimension_numbers<[1], [0], [0], [1], [0, 0, 1, 1], [], []>} : vector<16x32xbf16>, vector<32x64xbf16>, vector<16x64xf32> -> vector<16x64xf32>
    %c0_3 = arith.constant 0 : index
    %c0_4 = arith.constant 0 : index
    %4 = vector.load %arg3[%c0_3, %c0_4] : memref<1x64xf32, #tpu.memory_space<vmem>>, vector<1x64xf32>
    %5 = vector.broadcast %4 : vector<1x64xf32> to vector<16x64xf32>
    %6 = arith.addf %3, %5 : vector<16x64xf32>
    %c0_5 = arith.constant 0 : index
    %c0_6 = arith.constant 0 : index
    %7 = vector.load %arg4[%c0_5, %c0_6] : memref<16x64xf32, #tpu.memory_space<vmem>>, vector<16x64xf32>
    tpu.vector_store %arg4[%c0_5, %c0_6], %6 {strides = array<i32>} : memref<16x64xf32, #tpu.memory_space<vmem>>, vector<16x64xf32>,
    return
  }
  func.func @transform_0(%arg0: i32) -> (i32, i32) {
    %c0_i32 = arith.constant 0 : i32
    %c0_i32_0 = arith.constant 0 : i32
    return %arg0, %c0_i32 : i32, i32
  }
  func.func @transform_1(%arg0: i32) -> (i32, i32) {
    %c0_i32 = arith.constant 0 : i32
    %c0_i32_0 = arith.constant 0 : i32
    %c0_i32_1 = arith.constant 0 : i32
    return %c0_i32, %c0_i32_0 : i32, i32
  }
  func.func @transform_2(%arg0: i32) -> (i32, i32) {
    %c0_i32 = arith.constant 0 : i32
    %c0_i32_0 = arith.constant 0 : i32
    %c0_i32_1 = arith.constant 0 : i32
    return %c0_i32, %c0_i32_0 : i32, i32
  }
  func.func @transform_3(%arg0: i32) -> (i32, i32) {
    %c0_i32 = arith.constant 0 : i32
    %c0_i32_0 = arith.constant 0 : i32
    return %arg0, %c0_i32 : i32, i32
  }
}

module attributes {stable_mosaic.version = 11 : i64} {
  func.func @_self_attn_kernel(%arg0: i32, %arg1: memref<1x8x96xf32, #tpu.memory_space<vmem>>, %arg2: memref<1x8x32xf32, #tpu.memory_space<vmem>>) attributes {dimension_semantics = [#tpu.dimension_semantics<parallel>], iteration_bounds = array<i64: 2>, scalar_prefetch = 0 : i64, scratch_operands = 0 : i64, tpu.core_type = #tpu.core_type<tc>, window_params = [{transform_indices = @transform_0, window_bounds = array<i64: 1, 8, 96>}, {transform_indices = @transform_1, window_bounds = array<i64: 1, 8, 32>}]} {
    %c0 = arith.constant 0 : index
    %c0_0 = arith.constant 0 : index
    %c0_1 = arith.constant 0 : index
    %0 = vector.load %arg1[%c0, %c0_0, %c0_1] : memref<1x8x96xf32, #tpu.memory_space<vmem>>, vector<1x8x96xf32>
    %1 = vector.shape_cast %0 : vector<1x8x96xf32> to vector<8x96xf32>
    %2 = vector.extract_strided_slice %1 {offsets = [0, 0], sizes = [8, 32], strides = [1, 1]} : vector<8x96xf32> to vector<8x32xf32>
    %3 = vector.extract_strided_slice %1 {offsets = [0, 32], sizes = [8, 32], strides = [1, 1]} : vector<8x96xf32> to vector<8x32xf32>
    %4 = vector.extract_strided_slice %1 {offsets = [0, 64], sizes = [8, 32], strides = [1, 1]} : vector<8x96xf32> to vector<8x32xf32>
    %5 = tpu.iota {dimensions = array<i32: 0>} : vector<8x8xi32>
    %6 = tpu.iota {dimensions = array<i32: 1>} : vector<8x8xi32>
    %7 = arith.cmpi slt, %5, %6 : vector<8x8xi32>
    %8 = vector.extract_strided_slice %2 {offsets = [0, 0], sizes = [8, 8], strides = [1, 1]} : vector<8x32xf32> to vector<8x8xf32>
    %9 = arith.truncf %8 : vector<8x8xf32> to vector<8x8xbf16>
    %10 = vector.extract_strided_slice %3 {offsets = [0, 0], sizes = [8, 8], strides = [1, 1]} : vector<8x32xf32> to vector<8x8xf32>
    %11 = arith.truncf %10 : vector<8x8xf32> to vector<8x8xbf16>
    %12 = vector.extract_strided_slice %4 {offsets = [0, 0], sizes = [8, 8], strides = [1, 1]} : vector<8x32xf32> to vector<8x8xf32>
    %13 = arith.truncf %12 : vector<8x8xf32> to vector<8x8xbf16>
    %cst = arith.constant dense<0.000000e+00> : vector<8x8xf32>
    %14 = tpu.matmul %9, %11, %cst {dimension_numbers = #tpu.dot_dimension_numbers<[1], [1], [0], [0], [0, 0, 1, 0], [], []>} : vector<8x8xbf16>, vector<8x8xbf16>, vector<8x8xf32> -> vector<8x8xf32>
    %cst_2 = arith.constant 0.353553385 : f32
    %15 = vector.broadcast %cst_2 : f32 to vector<8x8xf32>
    %16 = arith.mulf %14, %15 : vector<8x8xf32>
    %cst_3 = arith.constant -1.000000e+30 : f32
    %17 = vector.broadcast %cst_3 : f32 to vector<8x8xf32>
    %18 = arith.select %7, %17, %16 : vector<8x8xi1>, vector<8x8xf32>
    %cst_4 = arith.constant dense<0xFF800000> : vector<8xf32>
    %19 = vector.multi_reduction <maximumf>, %18, %cst_4 [1] : vector<8x8xf32> to vector<8xf32>
    %20 = vector.shape_cast %19 : vector<8xf32> to vector<8x1xf32>
    %21 = vector.broadcast %20 : vector<8x1xf32> to vector<8x8xf32>
    %22 = arith.subf %18, %21 : vector<8x8xf32>
    %23 = math.exp %22 : vector<8x8xf32>
    %cst_5 = arith.constant dense<0.000000e+00> : vector<8xf32>
    %24 = vector.multi_reduction <add>, %23, %cst_5 [1] : vector<8x8xf32> to vector<8xf32>
    %25 = vector.shape_cast %24 : vector<8xf32> to vector<8x1xf32>
    %26 = tpu.reciprocal %25 {approx = true} : vector<8x1xf32> -> vector<8x1xf32>
    %27 = vector.broadcast %26 : vector<8x1xf32> to vector<8x8xf32>
    %28 = arith.mulf %23, %27 : vector<8x8xf32>
    %29 = arith.truncf %28 : vector<8x8xf32> to vector<8x8xbf16>
    %cst_6 = arith.constant dense<0.000000e+00> : vector<8x8xf32>
    %30 = tpu.matmul %29, %13, %cst_6 {dimension_numbers = #tpu.dot_dimension_numbers<[1], [0], [0], [1], [0, 0, 1, 1], [], []>} : vector<8x8xbf16>, vector<8x8xbf16>, vector<8x8xf32> -> vector<8x8xf32>
    %31 = vector.extract_strided_slice %2 {offsets = [0, 8], sizes = [8, 8], strides = [1, 1]} : vector<8x32xf32> to vector<8x8xf32>
    %32 = arith.truncf %31 : vector<8x8xf32> to vector<8x8xbf16>
    %33 = vector.extract_strided_slice %3 {offsets = [0, 8], sizes = [8, 8], strides = [1, 1]} : vector<8x32xf32> to vector<8x8xf32>
    %34 = arith.truncf %33 : vector<8x8xf32> to vector<8x8xbf16>
    %35 = vector.extract_strided_slice %4 {offsets = [0, 8], sizes = [8, 8], strides = [1, 1]} : vector<8x32xf32> to vector<8x8xf32>
    %36 = arith.truncf %35 : vector<8x8xf32> to vector<8x8xbf16>
    %cst_7 = arith.constant dense<0.000000e+00> : vector<8x8xf32>
    %37 = tpu.matmul %32, %34, %cst_7 {dimension_numbers = #tpu.dot_dimension_numbers<[1], [1], [0], [0], [0, 0, 1, 0], [], []>} : vector<8x8xbf16>, vector<8x8xbf16>, vector<8x8xf32> -> vector<8x8xf32>
    %cst_8 = arith.constant 0.353553385 : f32
    %38 = vector.broadcast %cst_8 : f32 to vector<8x8xf32>
    %39 = arith.mulf %37, %38 : vector<8x8xf32>
    %cst_9 = arith.constant -1.000000e+30 : f32
    %40 = vector.broadcast %cst_9 : f32 to vector<8x8xf32>
    %41 = arith.select %7, %40, %39 : vector<8x8xi1>, vector<8x8xf32>
    %cst_10 = arith.constant dense<0xFF800000> : vector<8xf32>
    %42 = vector.multi_reduction <maximumf>, %41, %cst_10 [1] : vector<8x8xf32> to vector<8xf32>
    %43 = vector.shape_cast %42 : vector<8xf32> to vector<8x1xf32>
    %44 = vector.broadcast %43 : vector<8x1xf32> to vector<8x8xf32>
    %45 = arith.subf %41, %44 : vector<8x8xf32>
    %46 = math.exp %45 : vector<8x8xf32>
    %cst_11 = arith.constant dense<0.000000e+00> : vector<8xf32>
    %47 = vector.multi_reduction <add>, %46, %cst_11 [1] : vector<8x8xf32> to vector<8xf32>
    %48 = vector.shape_cast %47 : vector<8xf32> to vector<8x1xf32>
    %49 = tpu.reciprocal %48 {approx = true} : vector<8x1xf32> -> vector<8x1xf32>
    %50 = vector.broadcast %49 : vector<8x1xf32> to vector<8x8xf32>
    %51 = arith.mulf %46, %50 : vector<8x8xf32>
    %52 = arith.truncf %51 : vector<8x8xf32> to vector<8x8xbf16>
    %cst_12 = arith.constant dense<0.000000e+00> : vector<8x8xf32>
    %53 = tpu.matmul %52, %36, %cst_12 {dimension_numbers = #tpu.dot_dimension_numbers<[1], [0], [0], [1], [0, 0, 1, 1], [], []>} : vector<8x8xbf16>, vector<8x8xbf16>, vector<8x8xf32> -> vector<8x8xf32>
    %54 = vector.extract_strided_slice %2 {offsets = [0, 16], sizes = [8, 8], strides = [1, 1]} : vector<8x32xf32> to vector<8x8xf32>
    %55 = arith.truncf %54 : vector<8x8xf32> to vector<8x8xbf16>
    %56 = vector.extract_strided_slice %3 {offsets = [0, 16], sizes = [8, 8], strides = [1, 1]} : vector<8x32xf32> to vector<8x8xf32>
    %57 = arith.truncf %56 : vector<8x8xf32> to vector<8x8xbf16>
    %58 = vector.extract_strided_slice %4 {offsets = [0, 16], sizes = [8, 8], strides = [1, 1]} : vector<8x32xf32> to vector<8x8xf32>
    %59 = arith.truncf %58 : vector<8x8xf32> to vector<8x8xbf16>
    %cst_13 = arith.constant dense<0.000000e+00> : vector<8x8xf32>
    %60 = tpu.matmul %55, %57, %cst_13 {dimension_numbers = #tpu.dot_dimension_numbers<[1], [1], [0], [0], [0, 0, 1, 0], [], []>} : vector<8x8xbf16>, vector<8x8xbf16>, vector<8x8xf32> -> vector<8x8xf32>
    %cst_14 = arith.constant 0.353553385 : f32
    %61 = vector.broadcast %cst_14 : f32 to vector<8x8xf32>
    %62 = arith.mulf %60, %61 : vector<8x8xf32>
    %cst_15 = arith.constant -1.000000e+30 : f32
    %63 = vector.broadcast %cst_15 : f32 to vector<8x8xf32>
    %64 = arith.select %7, %63, %62 : vector<8x8xi1>, vector<8x8xf32>
    %cst_16 = arith.constant dense<0xFF800000> : vector<8xf32>
    %65 = vector.multi_reduction <maximumf>, %64, %cst_16 [1] : vector<8x8xf32> to vector<8xf32>
    %66 = vector.shape_cast %65 : vector<8xf32> to vector<8x1xf32>
    %67 = vector.broadcast %66 : vector<8x1xf32> to vector<8x8xf32>
    %68 = arith.subf %64, %67 : vector<8x8xf32>
    %69 = math.exp %68 : vector<8x8xf32>
    %cst_17 = arith.constant dense<0.000000e+00> : vector<8xf32>
    %70 = vector.multi_reduction <add>, %69, %cst_17 [1] : vector<8x8xf32> to vector<8xf32>
    %71 = vector.shape_cast %70 : vector<8xf32> to vector<8x1xf32>
    %72 = tpu.reciprocal %71 {approx = true} : vector<8x1xf32> -> vector<8x1xf32>
    %73 = vector.broadcast %72 : vector<8x1xf32> to vector<8x8xf32>
    %74 = arith.mulf %69, %73 : vector<8x8xf32>
    %75 = arith.truncf %74 : vector<8x8xf32> to vector<8x8xbf16>
    %cst_18 = arith.constant dense<0.000000e+00> : vector<8x8xf32>
    %76 = tpu.matmul %75, %59, %cst_18 {dimension_numbers = #tpu.dot_dimension_numbers<[1], [0], [0], [1], [0, 0, 1, 1], [], []>} : vector<8x8xbf16>, vector<8x8xbf16>, vector<8x8xf32> -> vector<8x8xf32>
    %77 = vector.extract_strided_slice %2 {offsets = [0, 24], sizes = [8, 8], strides = [1, 1]} : vector<8x32xf32> to vector<8x8xf32>
    %78 = arith.truncf %77 : vector<8x8xf32> to vector<8x8xbf16>
    %79 = vector.extract_strided_slice %3 {offsets = [0, 24], sizes = [8, 8], strides = [1, 1]} : vector<8x32xf32> to vector<8x8xf32>
    %80 = arith.truncf %79 : vector<8x8xf32> to vector<8x8xbf16>
    %81 = vector.extract_strided_slice %4 {offsets = [0, 24], sizes = [8, 8], strides = [1, 1]} : vector<8x32xf32> to vector<8x8xf32>
    %82 = arith.truncf %81 : vector<8x8xf32> to vector<8x8xbf16>
    %cst_19 = arith.constant dense<0.000000e+00> : vector<8x8xf32>
    %83 = tpu.matmul %78, %80, %cst_19 {dimension_numbers = #tpu.dot_dimension_numbers<[1], [1], [0], [0], [0, 0, 1, 0], [], []>} : vector<8x8xbf16>, vector<8x8xbf16>, vector<8x8xf32> -> vector<8x8xf32>
    %cst_20 = arith.constant 0.353553385 : f32
    %84 = vector.broadcast %cst_20 : f32 to vector<8x8xf32>
    %85 = arith.mulf %83, %84 : vector<8x8xf32>
    %cst_21 = arith.constant -1.000000e+30 : f32
    %86 = vector.broadcast %cst_21 : f32 to vector<8x8xf32>
    %87 = arith.select %7, %86, %85 : vector<8x8xi1>, vector<8x8xf32>
    %cst_22 = arith.constant dense<0xFF800000> : vector<8xf32>
    %88 = vector.multi_reduction <maximumf>, %87, %cst_22 [1] : vector<8x8xf32> to vector<8xf32>
    %89 = vector.shape_cast %88 : vector<8xf32> to vector<8x1xf32>
    %90 = vector.broadcast %89 : vector<8x1xf32> to vector<8x8xf32>
    %91 = arith.subf %87, %90 : vector<8x8xf32>
    %92 = math.exp %91 : vector<8x8xf32>
    %cst_23 = arith.constant dense<0.000000e+00> : vector<8xf32>
    %93 = vector.multi_reduction <add>, %92, %cst_23 [1] : vector<8x8xf32> to vector<8xf32>
    %94 = vector.shape_cast %93 : vector<8xf32> to vector<8x1xf32>
    %95 = tpu.reciprocal %94 {approx = true} : vector<8x1xf32> -> vector<8x1xf32>
    %96 = vector.broadcast %95 : vector<8x1xf32> to vector<8x8xf32>
    %97 = arith.mulf %92, %96 : vector<8x8xf32>
    %98 = arith.truncf %97 : vector<8x8xf32> to vector<8x8xbf16>
    %cst_24 = arith.constant dense<0.000000e+00> : vector<8x8xf32>
    %99 = tpu.matmul %98, %82, %cst_24 {dimension_numbers = #tpu.dot_dimension_numbers<[1], [0], [0], [1], [0, 0, 1, 1], [], []>} : vector<8x8xbf16>, vector<8x8xbf16>, vector<8x8xf32> -> vector<8x8xf32>
    %100 = tpu.concatenate %30, %53, %76, %99 in 1 : vector<8x8xf32>, vector<8x8xf32>, vector<8x8xf32>, vector<8x8xf32> -> vector<8x32xf32>
    %c0_25 = arith.constant 0 : index
    %c0_26 = arith.constant 0 : index
    %c0_27 = arith.constant 0 : index
    %101 = vector.load %arg2[%c0_25, %c0_26, %c0_27] : memref<1x8x32xf32, #tpu.memory_space<vmem>>, vector<1x8x32xf32>
    %102 = vector.shape_cast %101 : vector<1x8x32xf32> to vector<8x32xf32>
    %103 = vector.shape_cast %100 : vector<8x32xf32> to vector<1x8x32xf32>
    tpu.vector_store %arg2[%c0_25, %c0_26, %c0_27], %103 {strides = array<i32>} : memref<1x8x32xf32, #tpu.memory_space<vmem>>, vector<1x8x32xf32>,
    return
  }
  func.func @transform_0(%arg0: i32) -> (i32, i32, i32) {
    %c0_i32 = arith.constant 0 : i32
    %c0_i32_0 = arith.constant 0 : i32
    %c0_i32_1 = arith.constant 0 : i32
    return %arg0, %c0_i32, %c0_i32_0 : i32, i32, i32
  }
  func.func @transform_1(%arg0: i32) -> (i32, i32, i32) {
    %c0_i32 = arith.constant 0 : i32
    %c0_i32_0 = arith.constant 0 : i32
    %c0_i32_1 = arith.constant 0 : i32
    return %arg0, %c0_i32, %c0_i32_0 : i32, i32, i32
  }
}

module attributes {stable_mosaic.version = 11 : i64} {
  func.func @_cross_attn_kernel(%arg0: i32, %arg1: memref<1x8x32xf32, #tpu.memory_space<vmem>>, %arg2: memref<1x8x64xf32, #tpu.memory_space<vmem>>, %arg3: memref<1x8x32xf32, #tpu.memory_space<vmem>>) attributes {dimension_semantics = [#tpu.dimension_semantics<parallel>], iteration_bounds = array<i64: 2>, scalar_prefetch = 0 : i64, scratch_operands = 0 : i64, tpu.core_type = #tpu.core_type<tc>, window_params = [{transform_indices = @transform_0, window_bounds = array<i64: 1, 8, 32>}, {transform_indices = @transform_1, window_bounds = array<i64: 1, 8, 64>}, {transform_indices = @transform_2, window_bounds = array<i64: 1, 8, 32>}]} {
    %c0 = arith.constant 0 : index
    %c0_0 = arith.constant 0 : index
    %c0_1 = arith.constant 0 : index
    %0 = vector.load %arg1[%c0, %c0_0, %c0_1] : memref<1x8x32xf32, #tpu.memory_space<vmem>>, vector<1x8x32xf32>
    %1 = vector.shape_cast %0 : vector<1x8x32xf32> to vector<8x32xf32>
    %c0_2 = arith.constant 0 : index
    %c0_3 = arith.constant 0 : index
    %c0_4 = arith.constant 0 : index
    %2 = vector.load %arg2[%c0_2, %c0_3, %c0_4] : memref<1x8x64xf32, #tpu.memory_space<vmem>>, vector<1x8x64xf32>
    %3 = vector.shape_cast %2 : vector<1x8x64xf32> to vector<8x64xf32>
    %4 = vector.extract_strided_slice %3 {offsets = [0, 0], sizes = [8, 32], strides = [1, 1]} : vector<8x64xf32> to vector<8x32xf32>
    %5 = vector.extract_strided_slice %3 {offsets = [0, 32], sizes = [8, 32], strides = [1, 1]} : vector<8x64xf32> to vector<8x32xf32>
    %6 = vector.extract_strided_slice %1 {offsets = [0, 0], sizes = [8, 8], strides = [1, 1]} : vector<8x32xf32> to vector<8x8xf32>
    %7 = arith.truncf %6 : vector<8x8xf32> to vector<8x8xbf16>
    %8 = vector.extract_strided_slice %4 {offsets = [0, 0], sizes = [8, 8], strides = [1, 1]} : vector<8x32xf32> to vector<8x8xf32>
    %9 = arith.truncf %8 : vector<8x8xf32> to vector<8x8xbf16>
    %10 = vector.extract_strided_slice %5 {offsets = [0, 0], sizes = [8, 8], strides = [1, 1]} : vector<8x32xf32> to vector<8x8xf32>
    %11 = arith.truncf %10 : vector<8x8xf32> to vector<8x8xbf16>
    %cst = arith.constant dense<0.000000e+00> : vector<8x8xf32>
    %12 = tpu.matmul %7, %9, %cst {dimension_numbers = #tpu.dot_dimension_numbers<[1], [1], [0], [0], [0, 0, 1, 0], [], []>} : vector<8x8xbf16>, vector<8x8xbf16>, vector<8x8xf32> -> vector<8x8xf32>
    %cst_5 = arith.constant 0.353553385 : f32
    %13 = vector.broadcast %cst_5 : f32 to vector<8x8xf32>
    %14 = arith.mulf %12, %13 : vector<8x8xf32>
    %cst_6 = arith.constant dense<0xFF800000> : vector<8xf32>
    %15 = vector.multi_reduction <maximumf>, %14, %cst_6 [1] : vector<8x8xf32> to vector<8xf32>
    %16 = vector.shape_cast %15 : vector<8xf32> to vector<8x1xf32>
    %17 = vector.broadcast %16 : vector<8x1xf32> to vector<8x8xf32>
    %18 = arith.subf %14, %17 : vector<8x8xf32>
    %19 = math.exp %18 : vector<8x8xf32>
    %cst_7 = arith.constant dense<0.000000e+00> : vector<8xf32>
    %20 = vector.multi_reduction <add>, %19, %cst_7 [1] : vector<8x8xf32> to vector<8xf32>
    %21 = vector.shape_cast %20 : vector<8xf32> to vector<8x1xf32>
    %22 = tpu.reciprocal %21 {approx = true} : vector<8x1xf32> -> vector<8x1xf32>
    %23 = vector.broadcast %22 : vector<8x1xf32> to vector<8x8xf32>
    %24 = arith.mulf %19, %23 : vector<8x8xf32>
    %25 = arith.truncf %24 : vector<8x8xf32> to vector<8x8xbf16>
    %cst_8 = arith.constant dense<0.000000e+00> : vector<8x8xf32>
    %26 = tpu.matmul %25, %11, %cst_8 {dimension_numbers = #tpu.dot_dimension_numbers<[1], [0], [0], [1], [0, 0, 1, 1], [], []>} : vector<8x8xbf16>, vector<8x8xbf16>, vector<8x8xf32> -> vector<8x8xf32>
    %27 = vector.extract_strided_slice %1 {offsets = [0, 8], sizes = [8, 8], strides = [1, 1]} : vector<8x32xf32> to vector<8x8xf32>
    %28 = arith.truncf %27 : vector<8x8xf32> to vector<8x8xbf16>
    %29 = vector.extract_strided_slice %4 {offsets = [0, 8], sizes = [8, 8], strides = [1, 1]} : vector<8x32xf32> to vector<8x8xf32>
    %30 = arith.truncf %29 : vector<8x8xf32> to vector<8x8xbf16>
    %31 = vector.extract_strided_slice %5 {offsets = [0, 8], sizes = [8, 8], strides = [1, 1]} : vector<8x32xf32> to vector<8x8xf32>
    %32 = arith.truncf %31 : vector<8x8xf32> to vector<8x8xbf16>
    %cst_9 = arith.constant dense<0.000000e+00> : vector<8x8xf32>
    %33 = tpu.matmul %28, %30, %cst_9 {dimension_numbers = #tpu.dot_dimension_numbers<[1], [1], [0], [0], [0, 0, 1, 0], [], []>} : vector<8x8xbf16>, vector<8x8xbf16>, vector<8x8xf32> -> vector<8x8xf32>
    %cst_10 = arith.constant 0.353553385 : f32
    %34 = vector.broadcast %cst_10 : f32 to vector<8x8xf32>
    %35 = arith.mulf %33, %34 : vector<8x8xf32>
    %cst_11 = arith.constant dense<0xFF800000> : vector<8xf32>
    %36 = vector.multi_reduction <maximumf>, %35, %cst_11 [1] : vector<8x8xf32> to vector<8xf32>
    %37 = vector.shape_cast %36 : vector<8xf32> to vector<8x1xf32>
    %38 = vector.broadcast %37 : vector<8x1xf32> to vector<8x8xf32>
    %39 = arith.subf %35, %38 : vector<8x8xf32>
    %40 = math.exp %39 : vector<8x8xf32>
    %cst_12 = arith.constant dense<0.000000e+00> : vector<8xf32>
    %41 = vector.multi_reduction <add>, %40, %cst_12 [1] : vector<8x8xf32> to vector<8xf32>
    %42 = vector.shape_cast %41 : vector<8xf32> to vector<8x1xf32>
    %43 = tpu.reciprocal %42 {approx = true} : vector<8x1xf32> -> vector<8x1xf32>
    %44 = vector.broadcast %43 : vector<8x1xf32> to vector<8x8xf32>
    %45 = arith.mulf %40, %44 : vector<8x8xf32>
    %46 = arith.truncf %45 : vector<8x8xf32> to vector<8x8xbf16>
    %cst_13 = arith.constant dense<0.000000e+00> : vector<8x8xf32>
    %47 = tpu.matmul %46, %32, %cst_13 {dimension_numbers = #tpu.dot_dimension_numbers<[1], [0], [0], [1], [0, 0, 1, 1], [], []>} : vector<8x8xbf16>, vector<8x8xbf16>, vector<8x8xf32> -> vector<8x8xf32>
    %48 = vector.extract_strided_slice %1 {offsets = [0, 16], sizes = [8, 8], strides = [1, 1]} : vector<8x32xf32> to vector<8x8xf32>
    %49 = arith.truncf %48 : vector<8x8xf32> to vector<8x8xbf16>
    %50 = vector.extract_strided_slice %4 {offsets = [0, 16], sizes = [8, 8], strides = [1, 1]} : vector<8x32xf32> to vector<8x8xf32>
    %51 = arith.truncf %50 : vector<8x8xf32> to vector<8x8xbf16>
    %52 = vector.extract_strided_slice %5 {offsets = [0, 16], sizes = [8, 8], strides = [1, 1]} : vector<8x32xf32> to vector<8x8xf32>
    %53 = arith.truncf %52 : vector<8x8xf32> to vector<8x8xbf16>
    %cst_14 = arith.constant dense<0.000000e+00> : vector<8x8xf32>
    %54 = tpu.matmul %49, %51, %cst_14 {dimension_numbers = #tpu.dot_dimension_numbers<[1], [1], [0], [0], [0, 0, 1, 0], [], []>} : vector<8x8xbf16>, vector<8x8xbf16>, vector<8x8xf32> -> vector<8x8xf32>
    %cst_15 = arith.constant 0.353553385 : f32
    %55 = vector.broadcast %cst_15 : f32 to vector<8x8xf32>
    %56 = arith.mulf %54, %55 : vector<8x8xf32>
    %cst_16 = arith.constant dense<0xFF800000> : vector<8xf32>
    %57 = vector.multi_reduction <maximumf>, %56, %cst_16 [1] : vector<8x8xf32> to vector<8xf32>
    %58 = vector.shape_cast %57 : vector<8xf32> to vector<8x1xf32>
    %59 = vector.broadcast %58 : vector<8x1xf32> to vector<8x8xf32>
    %60 = arith.subf %56, %59 : vector<8x8xf32>
    %61 = math.exp %60 : vector<8x8xf32>
    %cst_17 = arith.constant dense<0.000000e+00> : vector<8xf32>
    %62 = vector.multi_reduction <add>, %61, %cst_17 [1] : vector<8x8xf32> to vector<8xf32>
    %63 = vector.shape_cast %62 : vector<8xf32> to vector<8x1xf32>
    %64 = tpu.reciprocal %63 {approx = true} : vector<8x1xf32> -> vector<8x1xf32>
    %65 = vector.broadcast %64 : vector<8x1xf32> to vector<8x8xf32>
    %66 = arith.mulf %61, %65 : vector<8x8xf32>
    %67 = arith.truncf %66 : vector<8x8xf32> to vector<8x8xbf16>
    %cst_18 = arith.constant dense<0.000000e+00> : vector<8x8xf32>
    %68 = tpu.matmul %67, %53, %cst_18 {dimension_numbers = #tpu.dot_dimension_numbers<[1], [0], [0], [1], [0, 0, 1, 1], [], []>} : vector<8x8xbf16>, vector<8x8xbf16>, vector<8x8xf32> -> vector<8x8xf32>
    %69 = vector.extract_strided_slice %1 {offsets = [0, 24], sizes = [8, 8], strides = [1, 1]} : vector<8x32xf32> to vector<8x8xf32>
    %70 = arith.truncf %69 : vector<8x8xf32> to vector<8x8xbf16>
    %71 = vector.extract_strided_slice %4 {offsets = [0, 24], sizes = [8, 8], strides = [1, 1]} : vector<8x32xf32> to vector<8x8xf32>
    %72 = arith.truncf %71 : vector<8x8xf32> to vector<8x8xbf16>
    %73 = vector.extract_strided_slice %5 {offsets = [0, 24], sizes = [8, 8], strides = [1, 1]} : vector<8x32xf32> to vector<8x8xf32>
    %74 = arith.truncf %73 : vector<8x8xf32> to vector<8x8xbf16>
    %cst_19 = arith.constant dense<0.000000e+00> : vector<8x8xf32>
    %75 = tpu.matmul %70, %72, %cst_19 {dimension_numbers = #tpu.dot_dimension_numbers<[1], [1], [0], [0], [0, 0, 1, 0], [], []>} : vector<8x8xbf16>, vector<8x8xbf16>, vector<8x8xf32> -> vector<8x8xf32>
    %cst_20 = arith.constant 0.353553385 : f32
    %76 = vector.broadcast %cst_20 : f32 to vector<8x8xf32>
    %77 = arith.mulf %75, %76 : vector<8x8xf32>
    %cst_21 = arith.constant dense<0xFF800000> : vector<8xf32>
    %78 = vector.multi_reduction <maximumf>, %77, %cst_21 [1] : vector<8x8xf32> to vector<8xf32>
    %79 = vector.shape_cast %78 : vector<8xf32> to vector<8x1xf32>
    %80 = vector.broadcast %79 : vector<8x1xf32> to vector<8x8xf32>
    %81 = arith.subf %77, %80 : vector<8x8xf32>
    %82 = math.exp %81 : vector<8x8xf32>
    %cst_22 = arith.constant dense<0.000000e+00> : vector<8xf32>
    %83 = vector.multi_reduction <add>, %82, %cst_22 [1] : vector<8x8xf32> to vector<8xf32>
    %84 = vector.shape_cast %83 : vector<8xf32> to vector<8x1xf32>
    %85 = tpu.reciprocal %84 {approx = true} : vector<8x1xf32> -> vector<8x1xf32>
    %86 = vector.broadcast %85 : vector<8x1xf32> to vector<8x8xf32>
    %87 = arith.mulf %82, %86 : vector<8x8xf32>
    %88 = arith.truncf %87 : vector<8x8xf32> to vector<8x8xbf16>
    %cst_23 = arith.constant dense<0.000000e+00> : vector<8x8xf32>
    %89 = tpu.matmul %88, %74, %cst_23 {dimension_numbers = #tpu.dot_dimension_numbers<[1], [0], [0], [1], [0, 0, 1, 1], [], []>} : vector<8x8xbf16>, vector<8x8xbf16>, vector<8x8xf32> -> vector<8x8xf32>
    %90 = tpu.concatenate %26, %47, %68, %89 in 1 : vector<8x8xf32>, vector<8x8xf32>, vector<8x8xf32>, vector<8x8xf32> -> vector<8x32xf32>
    %c0_24 = arith.constant 0 : index
    %c0_25 = arith.constant 0 : index
    %c0_26 = arith.constant 0 : index
    %91 = vector.load %arg3[%c0_24, %c0_25, %c0_26] : memref<1x8x32xf32, #tpu.memory_space<vmem>>, vector<1x8x32xf32>
    %92 = vector.shape_cast %91 : vector<1x8x32xf32> to vector<8x32xf32>
    %93 = vector.shape_cast %90 : vector<8x32xf32> to vector<1x8x32xf32>
    tpu.vector_store %arg3[%c0_24, %c0_25, %c0_26], %93 {strides = array<i32>} : memref<1x8x32xf32, #tpu.memory_space<vmem>>, vector<1x8x32xf32>,
    return
  }
  func.func @transform_0(%arg0: i32) -> (i32, i32, i32) {
    %c0_i32 = arith.constant 0 : i32
    %c0_i32_0 = arith.constant 0 : i32
    %c0_i32_1 = arith.constant 0 : i32
    return %arg0, %c0_i32, %c0_i32_0 : i32, i32, i32
  }
  func.func @transform_1(%arg0: i32) -> (i32, i32, i32) {
    %c0_i32 = arith.constant 0 : i32
    %c0_i32_0 = arith.constant 0 : i32
    %c0_i32_1 = arith.constant 0 : i32
    return %arg0, %c0_i32, %c0_i32_0 : i32, i32, i32
  }
  func.func @transform_2(%arg0: i32) -> (i32, i32, i32) {
    %c0_i32 = arith.constant 0 : i32
    %c0_i32_0 = arith.constant 0 : i32
    %c0_i32_1 = arith.constant 0 : i32
    return %arg0, %c0_i32, %c0_i32_0 : i32, i32, i32
  }
}

module attributes {stable_mosaic.version = 11 : i64} {
  func.func @_matmul_bias_kernel(%arg0: i32, %arg1: memref<16x32xf32, #tpu.memory_space<vmem>>, %arg2: memref<32x32xbf16, #tpu.memory_space<vmem>>, %arg3: memref<1x32xf32, #tpu.memory_space<vmem>>, %arg4: memref<16x32xf32, #tpu.memory_space<vmem>>) attributes {dimension_semantics = [#tpu.dimension_semantics<parallel>], iteration_bounds = array<i64: 1>, scalar_prefetch = 0 : i64, scratch_operands = 0 : i64, tpu.core_type = #tpu.core_type<tc>, window_params = [{transform_indices = @transform_0, window_bounds = array<i64: 16, 32>}, {pipeline_mode = #tpu.pipeline_mode<synchronous>, transform_indices = @transform_1, window_bounds = array<i64: 32, 32>}, {pipeline_mode = #tpu.pipeline_mode<synchronous>, transform_indices = @transform_2, window_bounds = array<i64: 1, 32>}, {transform_indices = @transform_3, window_bounds = array<i64: 16, 32>}]} {
    %c0 = arith.constant 0 : index
    %c0_0 = arith.constant 0 : index
    %0 = vector.load %arg1[%c0, %c0_0] : memref<16x32xf32, #tpu.memory_space<vmem>>, vector<16x32xf32>
    %1 = arith.truncf %0 : vector<16x32xf32> to vector<16x32xbf16>
    %c0_1 = arith.constant 0 : index
    %c0_2 = arith.constant 0 : index
    %2 = vector.load %arg2[%c0_1, %c0_2] : memref<32x32xbf16, #tpu.memory_space<vmem>>, vector<32x32xbf16>
    %cst = arith.constant dense<0.000000e+00> : vector<16x32xf32>
    %3 = tpu.matmul %1, %2, %cst {dimension_numbers = #tpu.dot_dimension_numbers<[1], [0], [0], [1], [0, 0, 1, 1], [], []>} : vector<16x32xbf16>, vector<32x32xbf16>, vector<16x32xf32> -> vector<16x32xf32>
    %c0_3 = arith.constant 0 : index
    %c0_4 = arith.constant 0 : index
    %4 = vector.load %arg3[%c0_3, %c0_4] : memref<1x32xf32, #tpu.memory_space<vmem>>, vector<1x32xf32>
    %5 = vector.broadcast %4 : vector<1x32xf32> to vector<16x32xf32>
    %6 = arith.addf %3, %5 : vector<16x32xf32>
    %c0_5 = arith.constant 0 : index
    %c0_6 = arith.constant 0 : index
    %7 = vector.load %arg4[%c0_5, %c0_6] : memref<16x32xf32, #tpu.memory_space<vmem>>, vector<16x32xf32>
    tpu.vector_store %arg4[%c0_5, %c0_6], %6 {strides = array<i32>} : memref<16x32xf32, #tpu.memory_space<vmem>>, vector<16x32xf32>,
    return
  }
  func.func @transform_0(%arg0: i32) -> (i32, i32) {
    %c0_i32 = arith.constant 0 : i32
    %c0_i32_0 = arith.constant 0 : i32
    return %arg0, %c0_i32 : i32, i32
  }
  func.func @transform_1(%arg0: i32) -> (i32, i32) {
    %c0_i32 = arith.constant 0 : i32
    %c0_i32_0 = arith.constant 0 : i32
    %c0_i32_1 = arith.constant 0 : i32
    return %c0_i32, %c0_i32_0 : i32, i32
  }
  func.func @transform_2(%arg0: i32) -> (i32, i32) {
    %c0_i32 = arith.constant 0 : i32
    %c0_i32_0 = arith.constant 0 : i32
    %c0_i32_1 = arith.constant 0 : i32
    return %c0_i32, %c0_i32_0 : i32, i32
  }
  func.func @transform_3(%arg0: i32) -> (i32, i32) {
    %c0_i32 = arith.constant 0 : i32
    %c0_i32_0 = arith.constant 0 : i32
    return %arg0, %c0_i32 : i32, i32
  }
}

module attributes {stable_mosaic.version = 11 : i64} {
  func.func @_fc_logsoftmax_kernel(%arg0: i32, %arg1: memref<16x32xf32, #tpu.memory_space<vmem>>, %arg2: memref<32x64xbf16, #tpu.memory_space<vmem>>, %arg3: memref<1x64xf32, #tpu.memory_space<vmem>>, %arg4: memref<16x64xf32, #tpu.memory_space<vmem>>) attributes {dimension_semantics = [#tpu.dimension_semantics<parallel>], iteration_bounds = array<i64: 1>, scalar_prefetch = 0 : i64, scratch_operands = 0 : i64, tpu.core_type = #tpu.core_type<tc>, window_params = [{transform_indices = @transform_0, window_bounds = array<i64: 16, 32>}, {pipeline_mode = #tpu.pipeline_mode<synchronous>, transform_indices = @transform_1, window_bounds = array<i64: 32, 64>}, {pipeline_mode = #tpu.pipeline_mode<synchronous>, transform_indices = @transform_2, window_bounds = array<i64: 1, 64>}, {transform_indices = @transform_3, window_bounds = array<i64: 16, 64>}]} {
    %c0 = arith.constant 0 : index
    %c0_0 = arith.constant 0 : index
    %0 = vector.load %arg1[%c0, %c0_0] : memref<16x32xf32, #tpu.memory_space<vmem>>, vector<16x32xf32>
    %1 = arith.truncf %0 : vector<16x32xf32> to vector<16x32xbf16>
    %c0_1 = arith.constant 0 : index
    %c0_2 = arith.constant 0 : index
    %2 = vector.load %arg2[%c0_1, %c0_2] : memref<32x64xbf16, #tpu.memory_space<vmem>>, vector<32x64xbf16>
    %cst = arith.constant dense<0.000000e+00> : vector<16x64xf32>
    %3 = tpu.matmul %1, %2, %cst {dimension_numbers = #tpu.dot_dimension_numbers<[1], [0], [0], [1], [0, 0, 1, 1], [], []>} : vector<16x32xbf16>, vector<32x64xbf16>, vector<16x64xf32> -> vector<16x64xf32>
    %c0_3 = arith.constant 0 : index
    %c0_4 = arith.constant 0 : index
    %4 = vector.load %arg3[%c0_3, %c0_4] : memref<1x64xf32, #tpu.memory_space<vmem>>, vector<1x64xf32>
    %5 = vector.broadcast %4 : vector<1x64xf32> to vector<16x64xf32>
    %6 = arith.addf %3, %5 : vector<16x64xf32>
    %cst_5 = arith.constant dense<0xFF800000> : vector<16xf32>
    %7 = vector.multi_reduction <maximumf>, %6, %cst_5 [1] : vector<16x64xf32> to vector<16xf32>
    %8 = vector.shape_cast %7 : vector<16xf32> to vector<16x1xf32>
    %9 = vector.broadcast %8 : vector<16x1xf32> to vector<16x64xf32>
    %10 = arith.subf %6, %9 : vector<16x64xf32>
    %11 = math.exp %10 : vector<16x64xf32>
    %cst_6 = arith.constant dense<0.000000e+00> : vector<16xf32>
    %12 = vector.multi_reduction <add>, %11, %cst_6 [1] : vector<16x64xf32> to vector<16xf32>
    %13 = vector.shape_cast %12 : vector<16xf32> to vector<16x1xf32>
    %14 = math.log %13 : vector<16x1xf32>
    %15 = vector.broadcast %14 : vector<16x1xf32> to vector<16x64xf32>
    %16 = arith.subf %10, %15 : vector<16x64xf32>
    %c0_7 = arith.constant 0 : index
    %c0_8 = arith.constant 0 : index
    %17 = vector.load %arg4[%c0_7, %c0_8] : memref<16x64xf32, #tpu.memory_space<vmem>>, vector<16x64xf32>
    tpu.vector_store %arg4[%c0_7, %c0_8], %16 {strides = array<i32>} : memref<16x64xf32, #tpu.memory_space<vmem>>, vector<16x64xf32>,
    return
  }
  func.func @transform_0(%arg0: i32) -> (i32, i32) {
    %c0_i32 = arith.constant 0 : i32
    %c0_i32_0 = arith.constant 0 : i32
    return %arg0, %c0_i32 : i32, i32
  }
  func.func @transform_1(%arg0: i32) -> (i32, i32) {
    %c0_i32 = arith.constant 0 : i32
    %c0_i32_0 = arith.constant 0 : i32
    %c0_i32_1 = arith.constant 0 : i32
    return %c0_i32, %c0_i32_0 : i32, i32
  }
  func.func @transform_2(%arg0: i32) -> (i32, i32) {
    %c0_i32 = arith.constant 0 : i32
    %c0_i32_0 = arith.constant 0 : i32
    %c0_i32_1 = arith.constant 0 : i32
    return %c0_i32, %c0_i32_0 : i32, i32
  }
  func.func @transform_3(%arg0: i32) -> (i32, i32) {
    %c0_i32 = arith.constant 0 : i32
    %c0_i32_0 = arith.constant 0 : i32
    return %arg0, %c0_i32 : i32, i32
  }
}

</mosaic_0001>

<bundles_post_ra>
// kernel: seq2seq_forward.18
= control target key start
LH: loop header
LB: loop body
LE: loop exit
PB: predicated region body
PF: predicated region fallthrough
CT: control target
= control target key end

     0   :  { %vm38_vm0 = vcmask 261120   ;;  %vm56_vm1 = vcmask 785408   ;;  %s116_s1 = inlined_call_operand.vmem [shape: bf16[32,96], index: 1, kind: input, shape index: {}]   ;;  %s117_s0 = inlined_call_operand.vmem [shape: f32[16,32], index: 0, kind: input, shape index: {}]   ;;  %s118_s2 = inlined_call_operand.vmem [shape: f32[1,96], index: 2, kind: input, shape index: {}]   ;;  %s119_s3 = inlined_call_operand.vmem [shape: f32[16,96], index: 3, kind: output, shape index: {}]  }
   0x1   :  { %v73_v0 = vld [vmem:[%s116_s1 + $0x8] sm:$0xff]  ;;  %v72_v1 = vld [vmem:[%s116_s1] sm:$0xff] }
   0x2   :  { %48 = vmatpush.bf16.msra.mxu0 %v73_v0  ;;  %v15_v2 = vld [vmem:[%s117_s0] sm:$0xff]  ;;  %v16_v3 = vld [vmem:[%s117_s0 + $0x8] sm:$0xff] }
   0x3   :  { %v17_v4 = vpack.c.bf16 %v16_v3, %v15_v2  ;;  %v74_v5 = vld [vmem:[%s118_s2] ss:$0 sm:$0xff] }
   0x6   :  { %49 = vmatpush.bf16.msra.mxu0 %v72_v1 }
   0x9   :  { %71 = vmatmul.msk.bf16.vlgmr.msra.gmra.mxu0 %vm38_vm0, %v17_v4 }
  0x86   :  { %v51_v6 = vpop.f32.mrf.mxu0 }
  0x87   :  { %v52_v7 = vadd.f32 %v74_v5, %v51_v6 }
  0x89   :  { %57 = vst.msk [vmem:[%s119_s3] sm:$0xff] %vm56_vm1, %v52_v7 }
  0x8e   :  { %v53_v8 = vpop.f32.mrf.mxu0 }
  0x8f   :  { %v54_v9 = vadd.f32 %v74_v5, %v53_v8 }
  0x91   :  { %58 = vst.msk [vmem:[%s119_s3 + $0x8] sm:$0xff] %vm56_vm1, %v54_v9 }

// kernel: seq2seq_forward.19
= control target key start
LH: loop header
LB: loop body
LE: loop exit
PB: predicated region body
PF: predicated region fallthrough
CT: control target
= control target key end

     0   :  { %s503_s6 = smov 0   ;;  %s569_s0 = inlined_call_operand.vmem [shape: f32[2,8,96], index: 0, kind: input, shape index: {}]   ;;  %s570_s1 = inlined_call_operand.vmem [shape: f32[2,8,32], index: 1, kind: output, shape index: {}]  }
   0x1 LB: > { %s416_s7 = sadd.s32 4294967295, %s477_s6   ;;  %p420_p0 = scmp.ge.s32.totalorder %s477_s6, 1  ;;  %s477_s6 = sphi %s503_s6, %s11_s6  }
   0x2   : > { %p86_p1 = scmp.lt.s32.totalorder %s477_s6, 3 }
   0x4   : > { %p87_p2 = pnand %p420_p0, %p86_p1 }
   0x5   : > { %p104_p3 = scmp.lt.s32.totalorder (!%p87_p2), %s416_s7, 1  ;;  %s479_s12 = smov (!%p87_p2), 96  }
   0x6   : > { %90 = sbr.rel (%p87_p2) target bundleno = 1193 (0x4a9), region = 24  ;;  %s480_s13 = smov (!%p87_p2), 88  }
   0x7   : > { %s481_s14 = smov (!%p87_p2), 120   ;;  %s482_s15 = smov (!%p87_p2), 64  }
   0x8   : > { %s483_s16 = smov (!%p87_p2), 80   ;;  %s484_s17 = smov (!%p87_p2), 72  }
   0x9   : > { %s485_s18 = smov (!%p87_p2), 112   ;;  %s486_s19 = smov (!%p87_p2), 104  }
   0xa   : > { %s487_s20 = smov (!%p87_p2), 56   ;;  %s488_s21 = smov (!%p87_p2), 40  }
   0xb   : > { %s572_s7 = smov (!%p104_p3, %s416_s7), 1  ;;  %vm118_vm0 = vcmask 64512   ;;  %vm156_vm1 = vcmask 1043456   ;;  %s489_s22 = smov 48   ;;  %vm357_vm2 = vcmask 130048   ;;  %vm359_vm3 = vcmask 195584  }
   0xc   : > { %s421_s8 = sshll.u32 %s572_s7, 3  ;;  %s490_s23 = smov 8   ;;  %vm361_vm4 = vcmask 261120  }
   0xd   : > { %s107_s11 = scalar_lea.vmem %s569_s0, %s421_s8  ;;  %s491_s24 = smov 16  }
   0xe   : > { %v113_v0 = vld [vmem:[%s107_s11] sm:$0xff]  ;;  %s492_s25 = smov 24   ;;  %s111_s28 = scalar_lea.vmem %s570_s1, %s421_s8 }
   0xf   : > { %v519_v1 = vpack.c.bf16 %v113_v0, %v113_v0 }
  0x11   : > { %116 = vrot.lane.b32.xlu0 %v519_v1, %s479_s12  ;;  %175 = vrot.lane.b32.xlu1 %v519_v1, %s480_s13 }
  0x12   : > { %173 = vrot.lane.b32.xlu2 %v519_v1, %s481_s14 }
  0x1a   : > { %151 = vrot.lane.b32.xlu2 %v519_v1, %s482_s15 }
  0x22   : > { %232 = vrot.lane.b32.xlu2 %v519_v1, %s483_s16 }
  0x2a   : > { %289 = vrot.lane.b32.xlu2 %v519_v1, %s484_s17 }
  0x32   : > { %230 = vrot.lane.b32.xlu2 %v519_v1, %s485_s18 }
  0x3a   : > { %287 = vrot.lane.b32.xlu2 %v519_v1, %s486_s19 }
  0x6c   : > { %v174_v6 = vpop.permute.xlu2 %173 }
  0x74   : > { %v152_v11 = vpop.permute.xlu2 %151 }
  0x75   : > { %v158_v16 = vsel %vm156_vm1, %v152_v11, 0 }
  0x76   : > { %167 = vmatpush.bf16.msra.mxu1 %v158_v16 }
  0x7c   : > { %v233_v12 = vpop.permute.xlu2 %232 }
  0x7d   : > { %v238_v14 = vsel %vm118_vm0, %v233_v12, 0 }
  0x7e   : > { %247 = vmatpush.bf16.xpose.msrb.mxu1 %v238_v14 }
  0x83   : > { %v117_v2 = vpop.permute.xlu0 %116  ;;  %v176_v4 = vpop.permute.xlu1 %175 }
  0x84   : > { %v123_v3 = vsel %vm118_vm0, %v117_v2, 0  ;;  %v181_v5 = vsel %vm118_vm0, %v176_v4, 0  ;;  %v290_v13 = vpop.permute.xlu2 %289 }
  0x85   : > { %132 = vmatpush.bf16.xpose.msra.mxu0 %v123_v3  ;;  %190 = vmatpush.bf16.xpose.msra.mxu2 %v181_v5  ;;  %v295_v15 = vsel %vm118_vm0, %v290_v13, 0 }
  0x8c   : > { %423 = vmatmul.msk.bf16.vlgmr.msra.gmra.mxu0 %vm118_vm0, %v519_v1  ;;  %425 = vmatmul.msk.bf16.vlgmr.msra.gmra.mxu2 %vm118_vm0, %v174_v6  ;;  %v231_v17 = vpop.permute.xlu2 %230 }
  0x8d   : > { %304 = vmatpush.bf16.xpose.msrb.mxu0 %v295_v15 }
  0x94   : > { %v288_v18 = vpop.permute.xlu2 %287 }
  0x9c   : > { %429 = vmatmul.msk.bf16.vlgmr.msrb.gmra.mxu0 %vm118_vm0, %v288_v18 }
 0x109   : > { %v134_v7 = vpop.f32.mrf.mxu0 }
 0x10a   : > { %v138_v8 = vmul.f32 0.35355338, %v134_v7 }
 0x10c   : > { %v139_v9 = vsel %vm118_vm0, %v138_v8, -inf }
 0x10d   : > { %140 = vmax.xlane.f32.xlu0 %v139_v9 }
 0x10f   : > { %v192_v19 = vpop.f32.mrf.mxu2 }
 0x110   : > { %v196_v20 = vmul.f32 0.35355338, %v192_v19 }
 0x111   : > { %v136_v10 = vpop.f32.mrf.mxu0 }
 0x112   : > { %v197_v22 = vsel %vm118_vm0, %v196_v20, -inf }
 0x113   : > { %198 = vmax.xlane.f32.xlu2 %v197_v22 }
 0x117   : > { %v194_v25 = vpop.f32.mrf.mxu2 }
 0x119   : > { %v306_v28 = vpop.f32.mrf.mxu0 }
 0x11a   : > { %v310_v29 = vmul.f32 0.35355338, %v306_v28 }
 0x11c   : > { %v311_v30 = vsel %vm118_vm0, %v310_v29, -inf }
 0x121   : > { %v308_v32 = vpop.f32.mrf.mxu0 }
 0x180   : > { %v141_v21 = vpop.xlane.xlu0 %140 }
 0x181   : > { %v142_v23 = vsub.f32 %v138_v8, %v141_v21 }
 0x183   : > { %v143_v24 = vmul.f32 1.442695, %v142_v23 }
 0x185   : > { %455 = vpow2.f32 %v143_v24 }
 0x186   : > { %v199_v37 = vpop.xlane.xlu2 %198 }
 0x187   : > { %v200_v39 = vsub.f32 %v196_v20, %v199_v37 }
 0x189   : > { %v201_v40 = vmul.f32 1.442695, %v200_v39 }
 0x18b   : > { %v456_v26 = vpop.eup %455 }
 0x18c   : > { %v145_v27 = vsel %vm118_vm0, %v456_v26, 0.0 }
 0x18d   : > { %146 = vadd.xlane.f32.xlu1 %v145_v27 }
 0x195   : > { %312 = vmax.xlane.f32.xlu1 %v311_v30 }
 0x1ae   : > { %209 = vrot.lane.b32.xlu1 %v519_v1, %s487_s20 }
 0x1b6   : > { %323 = vrot.lane.b32.xlu1 %v519_v1, %s488_s21 }
 0x200   : > { %v147_v31 = vpop.xlane.xlu1 %146 }
 0x201   : > { %457 = vrcp.f32 %v147_v31 }
 0x202   : > { %459 = vpow2.f32 %v201_v40 }
 0x207   : > { %v458_v33 = vpop.eup %457 }
 0x208   : > { %v149_v34 = vmul.f32 %v458_v33, %v456_v26  ;;  %v313_v41 = vpop.xlane.xlu1 %312  ;;  %v460_v47 = vpop.eup %459 }
 0x209   : > { %v314_v44 = vsub.f32 %v310_v29, %v313_v41  ;;  %v203_v49 = vsel %vm118_vm0, %v460_v47, 0.0 }
 0x20a   : > { %v150_v35 = vpack.c.bf16 %v149_v34, %v149_v34 }
 0x20b   : > { %v315_v46 = vmul.f32 1.442695, %v314_v44 }
 0x20c   : > { %424 = vmatmul.msk.bf16.vlgmr.msra.gmra.mxu1 %vm118_vm0, %v150_v35 }
 0x20d   : > { %461 = vpow2.f32 %v315_v46 }
 0x213   : > { %v462_v50 = vpop.eup %461 }
 0x214   : > { %v317_v51 = vsel %vm118_vm0, %v462_v50, 0.0 }
 0x21c   : > { %427 = vmatmul.msk.bf16.vlgmr.msrb.gmra.mxu1 %vm118_vm0, %v231_v17 }
 0x220   : > { %v210_v52 = vpop.permute.xlu1 %209 }
 0x221   : > { %v215_v53 = vsel %vm156_vm1, %v210_v52, 0 }
 0x222   : > { %224 = vmatpush.bf16.msra.mxu3 %v215_v53 }
 0x228   : > { %v324_v54 = vpop.permute.xlu1 %323 }
 0x229   : > { %v329_v55 = vsel %vm156_vm1, %v324_v54, 0 }
 0x22a   : > { %338 = vmatpush.bf16.msrb.mxu2 %v329_v55 }
 0x289   : > { %v546_v36 = vpop.f32.mrf.mxu1 }
 0x291   : > { %v171_v38 = vpop.f32.mrf.mxu1 }
 0x299   : > { %v249_v42 = vpop.f32.mrf.mxu1 }
 0x29a   : > { %v253_v43 = vmul.f32 0.35355338, %v249_v42 }
 0x29c   : > { %v254_v45 = vsel %vm118_vm0, %v253_v43, -inf }
 0x29d   : > { %255 = vmax.xlane.f32.xlu0 %v254_v45 }
 0x2a1   : > { %v251_v48 = vpop.f32.mrf.mxu1 }
 0x2a5   : > { %204 = vadd.xlane.f32.xlu0 %v203_v49 }
 0x2ad   : > { %318 = vadd.xlane.f32.xlu0 %v317_v51 }
 0x310   : > { %v256_v56 = vpop.xlane.xlu0 %255 }
 0x311   : > { %v257_v57 = vsub.f32 %v253_v43, %v256_v56 }
 0x313   : > { %v258_v58 = vmul.f32 1.442695, %v257_v57 }
 0x315   : > { %463 = vpow2.f32 %v258_v58 }
 0x318   : > { %v205_v59 = vpop.xlane.xlu0 %204 }
 0x319   : > { %465 = vrcp.f32 %v205_v59 }
 0x31b   : > { %v464_v60 = vpop.eup %463 }
 0x31c   : > { %v260_v61 = vsel %vm118_vm0, %v464_v60, 0.0 }
 0x31d   : > { %261 = vadd.xlane.f32.xlu0 %v260_v61 }
 0x31f   : > { %v466_v62 = vpop.eup %465 }
 0x320   : > { %v319_v63 = vpop.xlane.xlu0 %318  ;;  %v207_v0 = vmul.f32 %v466_v62, %v460_v47 }
 0x321   : > { %467 = vrcp.f32 %v319_v63 }
 0x322   : > { %v208_v2 = vpack.c.bf16 %v207_v0, %v207_v0 }
 0x324   : > { %426 = vmatmul.msk.bf16.vlgmr.msra.gmra.mxu3 %vm118_vm0, %v208_v2 }
 0x327   : > { %v468_v3 = vpop.eup %467 }
 0x328   : > { %v321_v4 = vmul.f32 %v468_v3, %v462_v50 }
 0x32a   : > { %v322_v5 = vpack.c.bf16 %v321_v4, %v321_v4 }
 0x32c   : > { %430 = vmatmul.msk.bf16.vlgmr.msrb.gmra.mxu2 %vm118_vm0, %v322_v5 }
 0x331   : > { %266 = vrot.lane.b32.xlu0 %v519_v1, %s489_s22 }
 0x390   : > { %v262_v6 = vpop.xlane.xlu0 %261 }
 0x391   : > { %469 = vrcp.f32 %v262_v6 }
 0x397   : > { %v470_v7 = vpop.eup %469 }
 0x398   : > { %v264_v8 = vmul.f32 %v470_v7, %v464_v60 }
 0x39a   : > { %v265_v11 = vpack.c.bf16 %v264_v8, %v264_v8 }
 0x3a3   : > { %v267_v9 = vpop.permute.xlu0 %266 }
 0x3a4   : > { %v272_v10 = vsel %vm156_vm1, %v267_v9, 0 }
 0x3a5   : > { %281 = vmatpush.bf16.msrb.mxu3 %v272_v10 }
 0x3a7   : > { %v226_v12 = vpop.f32.mrf.mxu3 }
 0x3a8   : > { %428 = vmatmul.msk.bf16.vlgmr.msrb.gmra.mxu3 %vm118_vm0, %v265_v11  ;;  %345 = vrot.lane.b32.xlu2 %v226_v12, %s490_s23 }
 0x3af   : > { %v228_v13 = vpop.f32.mrf.mxu3  ;;  %v340_v14 = vpop.f32.mrf.mxu2 }
 0x3b7   : > { %v342_v15 = vpop.f32.mrf.mxu2 }
 0x402   : > { %v346_v18 = vpop.permute.xlu2 %345 }
 0x403   : > { %v356_v19 = vsel %vm118_vm0, %v546_v36, %v346_v18 }
 0x42b   : > { %v283_v16 = vpop.f32.mrf.mxu3 }
 0x42c   : > { %349 = vrot.lane.b32.xlu1 %v283_v16, %s491_s24 }
 0x433   : > { %v285_v1 = vpop.f32.mrf.mxu3 }
 0x434   : > { %353 = vrot.lane.b32.xlu1 %v340_v14, %s492_s25 }
 0x49e   : > { %v350_v17 = vpop.permute.xlu1 %349 }
 0x49f   : > { %v358_v20 = vsel %vm357_vm2, %v356_v19, %v350_v17 }
 0x4a6   : > { %v354_v21 = vpop.permute.xlu1 %353 }
 0x4a7   : > { %v360_v22 = vsel %vm359_vm3, %v358_v20, %v354_v21 }
 0x4a8   : > { %362 = vst.msk [vmem:[%s111_s28] sm:$0xff] %vm361_vm4, %v360_v22 }
 0x4a9 PF: > { %s11_s6 = sadd.s32 1, %s477_s6  }
 0x4aa   : > { %p8_p4 = scmp.ge.s32.totalorder %s11_s6, 4  }
 0x4ac   :  { %10 = sbr.rel (!%p8_p4) target bundleno = 1 (0x1), region = 54 }

// kernel: seq2seq_forward.20
= control target key start
LH: loop header
LB: loop body
LE: loop exit
PB: predicated region body
PF: predicated region fallthrough
CT: control target
= control target key end

     0   :  { %vm47_vm0 = vcmask 261120   ;;  %v159_v16 = vmov 32.0   ;;  %s235_s2 = inlined_call_operand.vmem [shape: bf16[32,32], index: 2, kind: input, shape index: {}]   ;;  %s236_s0 = inlined_call_operand.vmem [shape: f32[16,32], index: 0, kind: input, shape index: {}]   ;;  %s237_s3 = inlined_call_operand.vmem [shape: f32[1,32], index: 3, kind: input, shape index: {}]   ;;  %s238_s1 = inlined_call_operand.vmem [shape: f32[16,32], index: 1, kind: input, shape index: {}]   ;;  %s239_s4 = inlined_call_operand.vmem [shape: f32[1,32], index: 4, kind: input, shape index: {}]   ;;  %s240_s5 = inlined_call_operand.vmem [shape: f32[1,32], index: 5, kind: input, shape index: {}]   ;;  %s241_s6 = inlined_call_operand.vmem [shape: f32[16,32], index: 6, kind: output, shape index: {}]  }
   0x1   :  { %v148_v0 = vld [vmem:[%s235_s2 + $0x8] sm:$0xff]  ;;  %v147_v1 = vld [vmem:[%s235_s2] sm:$0xff]  ;;  %153 = vrcp.f32 %v159_v16 }
   0x2   :  { %57 = vmatpush.bf16.msra.mxu0 %v148_v0  ;;  %v24_v2 = vld [vmem:[%s236_s0] sm:$0xff]  ;;  %v25_v3 = vld [vmem:[%s236_s0 + $0x8] sm:$0xff] }
   0x3   :  { %v26_v4 = vpack.c.bf16 %v25_v3, %v24_v2  ;;  %v150_v5 = vld [vmem:[%s237_s3] ss:$0 sm:$0xff]  ;;  %v66_v12 = vld [vmem:[%s238_s1 + $0x8] sm:$0xff] }
   0x4   :  { %v65_v7 = vld [vmem:[%s238_s1] sm:$0xff] }
   0x5   :  { %v151_v47 = vld [vmem:[%s239_s4] ss:$0 sm:$0xff] }
   0x6   :  { %58 = vmatpush.bf16.msra.mxu0 %v147_v1  ;;  %v152_v50 = vld [vmem:[%s240_s5] ss:$0 sm:$0xff] }
   0x7   :  { %v154_v17 = vpop.eup %153 }
   0x8   :  { %v78_v18 = vmul.f32 32.0, %v154_v17  ;;  %vm82_vm1 = vweird.f32 %v154_v17 }
   0x9   :  { %146 = vmatmul.msk.bf16.vlgmr.msra.gmra.mxu0 %vm47_vm0, %v26_v4 }
   0xa   :  { %v79_v19 = vsub.f32 1.0, %v78_v18 }
   0xc   :  { %v80_v20 = vmul.f32 %v154_v17, %v79_v19 }
   0xe   :  { %v81_v21 = vadd.f32 %v154_v17, %v80_v20 }
  0x10   :  { %v83_v22 = vsel %vm82_vm1, %v154_v17, %v81_v21 }
  0x86   :  { %v60_v6 = vpop.f32.mrf.mxu0 }
  0x87   :  { %v61_v8 = vadd.f32 %v150_v5, %v60_v6 }
  0x89   :  { %v67_v9 = vadd.f32 %v65_v7, %v61_v8 }
  0x8b   :  { %v71_v10 = vsel %vm47_vm0, %v67_v9, 0.0 }
  0x8c   :  { %72 = vadd.xlane.f32.xlu0 %v71_v10 }
  0x8e   :  { %v62_v11 = vpop.f32.mrf.mxu0 }
  0x8f   :  { %v63_v13 = vadd.f32 %v150_v5, %v62_v11 }
  0x91   :  { %v68_v14 = vadd.f32 %v66_v12, %v63_v13 }
  0x93   :  { %v74_v15 = vsel %vm47_vm0, %v68_v14, 0.0 }
  0x94   :  { %75 = vadd.xlane.f32.xlu0 %v74_v15 }
  0xff   :  { %v73_v23 = vpop.xlane.xlu0 %72 }
 0x100   :  { %v84_v24 = vmul.f32 %v83_v22, %v73_v23 }
 0x102   :  { %v86_v25 = vsub.f32 %v67_v9, %v84_v24 }
 0x104   :  { %v88_v26 = vmul.f32 %v86_v25, %v86_v25 }
 0x106   :  { %v90_v27 = vsel %vm47_vm0, %v88_v26, 0.0 }
 0x107   :  { %91 = vadd.xlane.f32.xlu1 %v90_v27  ;;  %v76_v28 = vpop.xlane.xlu0 %75 }
 0x108   :  { %v85_v29 = vmul.f32 %v83_v22, %v76_v28 }
 0x10a   :  { %v87_v30 = vsub.f32 %v68_v14, %v85_v29 }
 0x10c   :  { %v89_v31 = vmul.f32 %v87_v30, %v87_v30 }
 0x10e   :  { %v93_v32 = vsel %vm47_vm0, %v89_v31, 0.0 }
 0x10f   :  { %94 = vadd.xlane.f32.xlu1 %v93_v32 }
 0x17a   :  { %v92_v33 = vpop.xlane.xlu1 %91 }
 0x17b   :  { %v96_v34 = vmul.f32 %v92_v33, %v83_v22 }
 0x17d   :  { %v98_v35 = vadd.f32 1e-05, %v96_v34 }
 0x17f   :  { %155 = vrsqrt.f32 %v98_v35  ;;  %vm106_vm3 = vweird.f32 %v98_v35 }
 0x182   :  { %v95_v36 = vpop.xlane.xlu1 %94 }
 0x183   :  { %v97_v37 = vmul.f32 %v95_v36, %v83_v22 }
 0x185   :  { %v156_v38 = vpop.eup %155  ;;  %v99_v39 = vadd.f32 1e-05, %v97_v37 }
 0x186   :  { %v101_v40 = vmul.f32 %v156_v38, %v98_v35  ;;  %vm107_vm2 = vweird.f32 %v156_v38 }
 0x187   :  { %157 = vrsqrt.f32 %v99_v39  ;;  %vm108_vm4 = vmor %vm106_vm3, %vm107_vm2  ;;  %vm116_vm6 = vweird.f32 %v99_v39 }
 0x188   :  { %v102_v41 = vmul.f32 %v156_v38, %v101_v40 }
 0x18a   :  { %v103_v42 = vmul.f32 0.5, %v102_v41 }
 0x18c   :  { %v104_v43 = vsub.f32 1.5, %v103_v42 }
 0x18d   :  { %v158_v44 = vpop.eup %157 }
 0x18e   :  { %v105_v45 = vmul.f32 %v156_v38, %v104_v43  ;;  %v111_v46 = vmul.f32 %v158_v44, %v99_v39  ;;  %vm117_vm5 = vweird.f32 %v158_v44 }
 0x18f   :  { %vm118_vm7 = vmor %vm116_vm6, %vm117_vm5 }
 0x190   :  { %v109_v48 = vsel %vm108_vm4, %v156_v38, %v105_v45  ;;  %v112_v49 = vmul.f32 %v158_v44, %v111_v46 }
 0x191   :  { %v120_v51 = vmul.f32 %v109_v48, %v86_v25 }
 0x192   :  { %v113_v52 = vmul.f32 0.5, %v112_v49 }
 0x193   :  { %v125_v53 = vmul.f32 %v151_v47, %v120_v51 }
 0x194   :  { %v114_v54 = vsub.f32 1.5, %v113_v52 }
 0x195   :  { %v130_v55 = vadd.f32 %v152_v50, %v125_v53 }
 0x196   :  { %v115_v56 = vmul.f32 %v158_v44, %v114_v54 }
 0x197   :  { %132 = vst.msk [vmem:[%s241_s6] sm:$0xff] %vm47_vm0, %v130_v55 }
 0x198   :  { %v119_v57 = vsel %vm118_vm7, %v158_v44, %v115_v56 }
 0x199   :  { %v121_v58 = vmul.f32 %v119_v57, %v87_v30 }
 0x19b   :  { %v126_v59 = vmul.f32 %v151_v47, %v121_v58 }
 0x19d   :  { %v131_v60 = vadd.f32 %v152_v50, %v126_v59 }
 0x19f   :  { %133 = vst.msk [vmem:[%s241_s6 + $0x8] sm:$0xff] %vm47_vm0, %v131_v60 }

// kernel: seq2seq_forward.21
= control target key start
LH: loop header
LB: loop body
LE: loop exit
PB: predicated region body
PF: predicated region fallthrough
CT: control target
= control target key end

     0   :  { %vm50_vm0 = vcmask 261120   ;;  %v286_v30 = vmov 32.0   ;;  %s388_s1 = inlined_call_operand.vmem [shape: bf16[32,128], index: 1, kind: input, shape index: {}]   ;;  %s389_s0 = inlined_call_operand.vmem [shape: f32[16,32], index: 0, kind: input, shape index: {}]   ;;  %s390_s3 = inlined_call_operand.vmem [shape: bf16[128,32], index: 3, kind: input, shape index: {}]   ;;  %s391_s2 = inlined_call_operand.vmem [shape: f32[1,128], index: 2, kind: input, shape index: {}]   ;;  %s392_s4 = inlined_call_operand.vmem [shape: f32[1,32], index: 4, kind: input, shape index: {}]   ;;  %s393_s5 = inlined_call_operand.vmem [shape: f32[1,32], index: 5, kind: input, shape index: {}]   ;;  %s394_s6 = inlined_call_operand.vmem [shape: f32[1,32], index: 6, kind: input, shape index: {}]   ;;  %s395_s7 = inlined_call_operand.vmem [shape: f32[16,32], index: 7, kind: output, shape index: {}]  }
   0x1   :  { %v266_v0 = vld [vmem:[%s388_s1 + $0x8] sm:$0xff]  ;;  %v265_v1 = vld [vmem:[%s388_s1] sm:$0xff]  ;;  %v274_v2 = vld [vmem:[%s390_s3 + $0x38] sm:$0xff]  ;;  %280 = vrcp.f32 %v286_v30 }
   0x2   :  { %60 = vmatpush.bf16.msra.mxu0 %v266_v0  ;;  %v27_v3 = vld [vmem:[%s389_s0] sm:$0xff]  ;;  %v28_v4 = vld [vmem:[%s389_s0 + $0x8] sm:$0xff]  ;;  %139 = vmatpush.bf16.msra.mxu1 %v274_v2  ;;  %v273_v5 = vld [vmem:[%s390_s3 + $0x30] sm:$0xff] }
   0x3   :  { %v29_v6 = vpack.c.bf16 %v28_v4, %v27_v3  ;;  %v272_v7 = vld [vmem:[%s390_s3 + $0x28] sm:$0xff]  ;;  %v271_v8 = vld [vmem:[%s390_s3 + $0x20] sm:$0xff]  ;;  %v270_v9 = vld [vmem:[%s390_s3 + $0x18] sm:$0xff] }
   0x4   :  { %v269_v10 = vld [vmem:[%s390_s3 + $0x10] sm:$0xff]  ;;  %v268_v11 = vld [vmem:[%s390_s3 + $0x8] sm:$0xff]  ;;  %v267_v12 = vld [vmem:[%s390_s3] sm:$0xff] }
   0x5   :  { %v276_v14 = vld [vmem:[%s391_s2] ss:$0 sm:$0xff] }
   0x6   :  { %61 = vmatpush.bf16.msra.mxu0 %v265_v1  ;;  %140 = vmatpush.bf16.msra.mxu1 %v273_v5  ;;  %v277_v21 = vld [vmem:[%s392_s4] ss:$0 sm:$0xff] }
   0x7   :  { %v281_v31 = vpop.eup %280  ;;  %v278_v61 = vld [vmem:[%s393_s5] ss:$0 sm:$0xff] }
   0x8   :  { %v164_v32 = vmul.f32 32.0, %v281_v31  ;;  %vm168_vm1 = vweird.f32 %v281_v31  ;;  %v279_v0 = vld [vmem:[%s394_s6] ss:$0 sm:$0xff] }
   0x9   :  { %232 = vmatmul.msk.bf16.vlgmr.msra.gmra.mxu0 %vm50_vm0, %v29_v6 }
   0xa   :  { %141 = vmatpush.bf16.msra.mxu1 %v272_v7  ;;  %v165_v33 = vsub.f32 1.0, %v164_v32 }
   0xc   :  { %v166_v34 = vmul.f32 %v281_v31, %v165_v33 }
   0xe   :  { %142 = vmatpush.bf16.msra.mxu1 %v271_v8  ;;  %v167_v35 = vadd.f32 %v281_v31, %v166_v34 }
  0x10   :  { %v169_v36 = vsel %vm168_vm1, %v281_v31, %v167_v35 }
  0x12   :  { %143 = vmatpush.bf16.msra.mxu1 %v270_v9 }
  0x16   :  { %144 = vmatpush.bf16.msra.mxu1 %v269_v10 }
  0x1a   :  { %145 = vmatpush.bf16.msra.mxu1 %v268_v11 }
  0x1e   :  { %146 = vmatpush.bf16.msra.mxu1 %v267_v12 }
  0x86   :  { %v63_v13 = vpop.f32.mrf.mxu0 }
  0x87   :  { %v64_v15 = vadd.f32 %v276_v14, %v63_v13 }
  0x89   :  { %v68_v18 = vmax.f32 %v64_v15, 0.0 }
  0x8e   :  { %v65_v16 = vpop.f32.mrf.mxu0 }
  0x8f   :  { %v66_v17 = vadd.f32 %v276_v14, %v65_v16 }
  0x91   :  { %v69_v19 = vmax.f32 %v66_v17, 0.0 }
  0x93   :  { %v70_v20 = vpack.c.bf16 %v69_v19, %v68_v18 }
  0x95   :  { %147 = vmatmul.bf16.vlgmr.msra.gmra.mxu1 %v70_v20 }
 0x112   :  { %v148_v22 = vpop.f32.mrf.mxu1 }
 0x113   :  { %v149_v23 = vadd.f32 %v277_v21, %v148_v22 }
 0x115   :  { %v153_v24 = vadd.f32 %v149_v23, %v27_v3 }
 0x117   :  { %v157_v25 = vsel %vm50_vm0, %v153_v24, 0.0 }
 0x118   :  { %158 = vadd.xlane.f32.xlu0 %v157_v25 }
 0x11a   :  { %v150_v26 = vpop.f32.mrf.mxu1 }
 0x11b   :  { %v151_v27 = vadd.f32 %v277_v21, %v150_v26 }
 0x11d   :  { %v154_v28 = vadd.f32 %v151_v27, %v28_v4 }
 0x11f   :  { %v160_v29 = vsel %vm50_vm0, %v154_v28, 0.0 }
 0x120   :  { %161 = vadd.xlane.f32.xlu0 %v160_v29 }
 0x18b   :  { %v159_v37 = vpop.xlane.xlu0 %158 }
 0x18c   :  { %v170_v38 = vmul.f32 %v169_v36, %v159_v37 }
 0x18e   :  { %v172_v39 = vsub.f32 %v153_v24, %v170_v38 }
 0x190   :  { %v174_v40 = vmul.f32 %v172_v39, %v172_v39 }
 0x192   :  { %v176_v41 = vsel %vm50_vm0, %v174_v40, 0.0 }
 0x193   :  { %177 = vadd.xlane.f32.xlu1 %v176_v41  ;;  %v162_v42 = vpop.xlane.xlu0 %161 }
 0x194   :  { %v171_v43 = vmul.f32 %v169_v36, %v162_v42 }
 0x196   :  { %v173_v44 = vsub.f32 %v154_v28, %v171_v43 }
 0x198   :  { %v175_v45 = vmul.f32 %v173_v44, %v173_v44 }
 0x19a   :  { %v179_v46 = vsel %vm50_vm0, %v175_v45, 0.0 }
 0x19b   :  { %180 = vadd.xlane.f32.xlu1 %v179_v46 }
 0x206   :  { %v178_v47 = vpop.xlane.xlu1 %177 }
 0x207   :  { %v182_v48 = vmul.f32 %v178_v47, %v169_v36 }
 0x209   :  { %v184_v49 = vadd.f32 1e-05, %v182_v48 }
 0x20b   :  { %282 = vrsqrt.f32 %v184_v49  ;;  %vm192_vm3 = vweird.f32 %v184_v49 }
 0x20e   :  { %v181_v50 = vpop.xlane.xlu1 %180 }
 0x20f   :  { %v183_v51 = vmul.f32 %v181_v50, %v169_v36 }
 0x211   :  { %v283_v52 = vpop.eup %282  ;;  %v185_v53 = vadd.f32 1e-05, %v183_v51 }
 0x212   :  { %v187_v54 = vmul.f32 %v283_v52, %v184_v49  ;;  %vm193_vm2 = vweird.f32 %v283_v52 }
 0x213   :  { %284 = vrsqrt.f32 %v185_v53  ;;  %vm194_vm4 = vmor %vm192_vm3, %vm193_vm2  ;;  %vm202_vm6 = vweird.f32 %v185_v53 }
 0x214   :  { %v188_v55 = vmul.f32 %v283_v52, %v187_v54 }
 0x216   :  { %v189_v56 = vmul.f32 0.5, %v188_v55 }
 0x218   :  { %v190_v57 = vsub.f32 1.5, %v189_v56 }
 0x219   :  { %v285_v58 = vpop.eup %284 }
 0x21a   :  { %v191_v59 = vmul.f32 %v283_v52, %v190_v57  ;;  %v197_v60 = vmul.f32 %v285_v58, %v185_v53  ;;  %vm203_vm5 = vweird.f32 %v285_v58 }
 0x21b   :  { %vm204_vm7 = vmor %vm202_vm6, %vm203_vm5 }
 0x21c   :  { %v195_v62 = vsel %vm194_vm4, %v283_v52, %v191_v59  ;;  %v198_v63 = vmul.f32 %v285_v58, %v197_v60 }
 0x21d   :  { %v206_v1 = vmul.f32 %v195_v62, %v172_v39 }
 0x21e   :  { %v199_v2 = vmul.f32 0.5, %v198_v63 }
 0x21f   :  { %v211_v3 = vmul.f32 %v278_v61, %v206_v1 }
 0x220   :  { %v200_v4 = vsub.f32 1.5, %v199_v2 }
 0x221   :  { %v216_v5 = vadd.f32 %v279_v0, %v211_v3 }
 0x222   :  { %v201_v6 = vmul.f32 %v285_v58, %v200_v4 }
 0x223   :  { %218 = vst.msk [vmem:[%s395_s7] sm:$0xff] %vm50_vm0, %v216_v5 }
 0x224   :  { %v205_v7 = vsel %vm204_vm7, %v285_v58, %v201_v6 }
 0x225   :  { %v207_v8 = vmul.f32 %v205_v7, %v173_v44 }
 0x227   :  { %v212_v9 = vmul.f32 %v278_v61, %v207_v8 }
 0x229   :  { %v217_v10 = vadd.f32 %v279_v0, %v212_v9 }
 0x22b   :  { %219 = vst.msk [vmem:[%s395_s7 + $0x8] sm:$0xff] %vm50_vm0, %v217_v10 }

// kernel: seq2seq_forward.31
= control target key start
LH: loop header
LB: loop body
LE: loop exit
PB: predicated region body
PF: predicated region fallthrough
CT: control target
= control target key end

     0   :  { %vm38_vm0 = vcmask 261120   ;;  %vm56_vm1 = vcmask 523264   ;;  %s116_s1 = inlined_call_operand.vmem [shape: bf16[32,64], index: 1, kind: input, shape index: {}]   ;;  %s117_s0 = inlined_call_operand.vmem [shape: f32[16,32], index: 0, kind: input, shape index: {}]   ;;  %s118_s2 = inlined_call_operand.vmem [shape: f32[1,64], index: 2, kind: input, shape index: {}]   ;;  %s119_s3 = inlined_call_operand.vmem [shape: f32[16,64], index: 3, kind: output, shape index: {}]  }
   0x1   :  { %v73_v0 = vld [vmem:[%s116_s1 + $0x8] sm:$0xff]  ;;  %v72_v1 = vld [vmem:[%s116_s1] sm:$0xff] }
   0x2   :  { %48 = vmatpush.bf16.msra.mxu0 %v73_v0  ;;  %v15_v2 = vld [vmem:[%s117_s0] sm:$0xff]  ;;  %v16_v3 = vld [vmem:[%s117_s0 + $0x8] sm:$0xff] }
   0x3   :  { %v17_v4 = vpack.c.bf16 %v16_v3, %v15_v2  ;;  %v74_v5 = vld [vmem:[%s118_s2] ss:$0 sm:$0xff] }
   0x6   :  { %49 = vmatpush.bf16.msra.mxu0 %v72_v1 }
   0x9   :  { %71 = vmatmul.msk.bf16.vlgmr.msra.gmra.mxu0 %vm38_vm0, %v17_v4 }
  0x86   :  { %v51_v6 = vpop.f32.mrf.mxu0 }
  0x87   :  { %v52_v7 = vadd.f32 %v74_v5, %v51_v6 }
  0x89   :  { %57 = vst.msk [vmem:[%s119_s3] sm:$0xff] %vm56_vm1, %v52_v7 }
  0x8e   :  { %v53_v8 = vpop.f32.mrf.mxu0 }
  0x8f   :  { %v54_v9 = vadd.f32 %v74_v5, %v53_v8 }
  0x91   :  { %58 = vst.msk [vmem:[%s119_s3 + $0x8] sm:$0xff] %vm56_vm1, %v54_v9 }

// kernel: seq2seq_forward.30
= control target key start
LH: loop header
LB: loop body
LE: loop exit
PB: predicated region body
PF: predicated region fallthrough
CT: control target
= control target key end

     0   :  { %vm38_vm0 = vcmask 261120   ;;  %s115_s1 = inlined_call_operand.vmem [shape: bf16[32,32], index: 1, kind: input, shape index: {}]   ;;  %s116_s0 = inlined_call_operand.vmem [shape: f32[16,32], index: 0, kind: input, shape index: {}]   ;;  %s117_s2 = inlined_call_operand.vmem [shape: f32[1,32], index: 2, kind: input, shape index: {}]   ;;  %s118_s3 = inlined_call_operand.vmem [shape: f32[16,32], index: 3, kind: output, shape index: {}]  }
   0x1   :  { %v72_v0 = vld [vmem:[%s115_s1 + $0x8] sm:$0xff]  ;;  %v71_v1 = vld [vmem:[%s115_s1] sm:$0xff] }
   0x2   :  { %48 = vmatpush.bf16.msra.mxu0 %v72_v0  ;;  %v15_v2 = vld [vmem:[%s116_s0] sm:$0xff]  ;;  %v16_v3 = vld [vmem:[%s116_s0 + $0x8] sm:$0xff] }
   0x3   :  { %v17_v4 = vpack.c.bf16 %v16_v3, %v15_v2  ;;  %v73_v5 = vld [vmem:[%s117_s2] ss:$0 sm:$0xff] }
   0x6   :  { %49 = vmatpush.bf16.msra.mxu0 %v71_v1 }
   0x9   :  { %70 = vmatmul.msk.bf16.vlgmr.msra.gmra.mxu0 %vm38_vm0, %v17_v4 }
  0x86   :  { %v51_v6 = vpop.f32.mrf.mxu0 }
  0x87   :  { %v52_v7 = vadd.f32 %v73_v5, %v51_v6 }
  0x89   :  { %56 = vst.msk [vmem:[%s118_s3] sm:$0xff] %vm38_vm0, %v52_v7 }
  0x8e   :  { %v53_v8 = vpop.f32.mrf.mxu0 }
  0x8f   :  { %v54_v9 = vadd.f32 %v73_v5, %v53_v8 }
  0x91   :  { %57 = vst.msk [vmem:[%s118_s3 + $0x8] sm:$0xff] %vm38_vm0, %v54_v9 }

// kernel: seq2seq_forward.27
= control target key start
LH: loop header
LB: loop body
LE: loop exit
PB: predicated region body
PF: predicated region fallthrough
CT: control target
= control target key end

     0   :  { %s512_s6 = smov 0   ;;  %s589_s0 = inlined_call_operand.vmem [shape: f32[2,8,96], index: 0, kind: input, shape index: {}]   ;;  %s590_s1 = inlined_call_operand.vmem [shape: f32[2,8,32], index: 1, kind: output, shape index: {}]  }
   0x1 LB: > { %s425_s7 = sadd.s32 4294967295, %s486_s6   ;;  %p429_p0 = scmp.ge.s32.totalorder %s486_s6, 1  ;;  %s486_s6 = sphi %s512_s6, %s11_s6  }
   0x2   : > { %p86_p1 = scmp.lt.s32.totalorder %s486_s6, 3 }
   0x4   : > { %p87_p2 = pnand %p429_p0, %p86_p1 }
   0x5   : > { %p104_p3 = scmp.lt.s32.totalorder (!%p87_p2), %s425_s7, 1  ;;  %s488_s12 = smov (!%p87_p2), 96  }
   0x6   : > { %90 = sbr.rel (%p87_p2) target bundleno = 1195 (0x4ab), region = 24  ;;  %s489_s13 = smov (!%p87_p2), 88  }
   0x7   : > { %s490_s14 = smov (!%p87_p2), 120   ;;  %s491_s15 = smov (!%p87_p2), 64  }
   0x8   : > { %s492_s16 = smov (!%p87_p2), 80   ;;  %s493_s17 = smov (!%p87_p2), 72  }
   0x9   : > { %s494_s18 = smov (!%p87_p2), 112   ;;  %s495_s19 = smov (!%p87_p2), 104  }
   0xa   : > { %s496_s20 = smov (!%p87_p2), 56   ;;  %s497_s21 = smov (!%p87_p2), 40  }
   0xb   : > { %s592_s7 = smov (!%p104_p3, %s425_s7), 1  ;;  %vm123_vm0 = vcmask 64512   ;;  %v114_v7 = vlaneseq  ;;  %vm162_vm2 = vcmask 1043456   ;;  %s498_s22 = smov 48   ;;  %vm366_vm3 = vcmask 130048  }
   0xc   : > { %s430_s8 = sshll.u32 %s592_s7, 3  ;;  %s499_s23 = smov 8   ;;  %vm368_vm4 = vcmask 195584   ;;  %vm370_vm5 = vcmask 261120  }
   0xd   : > { %s107_s11 = scalar_lea.vmem %s589_s0, %s430_s8  ;;  %v543_v8 = vshrl.u32 %v114_v7, 7  ;;  %v117_v9 = vand.u32 127, %v114_v7  ;;  %s500_s24 = smov 16  }
   0xe   : > { %v113_v0 = vld [vmem:[%s107_s11] sm:$0xff]  ;;  %s501_s25 = smov 24   ;;  %s111_s28 = scalar_lea.vmem %s590_s1, %s430_s8 }
   0xf   : > { %v528_v1 = vpack.c.bf16 %v113_v0, %v113_v0  ;;  %vm118_vm1 = vcmp.lt.s32.totalorder %v543_v8, %v117_v9 }
  0x11   : > { %121 = vrot.lane.b32.xlu0 %v528_v1, %s488_s12  ;;  %181 = vrot.lane.b32.xlu1 %v528_v1, %s489_s13 }
  0x12   : > { %179 = vrot.lane.b32.xlu2 %v528_v1, %s490_s14 }
  0x1a   : > { %157 = vrot.lane.b32.xlu2 %v528_v1, %s491_s15 }
  0x22   : > { %239 = vrot.lane.b32.xlu2 %v528_v1, %s492_s16 }
  0x2a   : > { %297 = vrot.lane.b32.xlu2 %v528_v1, %s493_s17 }
  0x32   : > { %237 = vrot.lane.b32.xlu2 %v528_v1, %s494_s18 }
  0x3a   : > { %295 = vrot.lane.b32.xlu2 %v528_v1, %s495_s19 }
  0x6c   : > { %v180_v6 = vpop.permute.xlu2 %179 }
  0x74   : > { %v158_v15 = vpop.permute.xlu2 %157 }
  0x75   : > { %v164_v20 = vsel %vm162_vm2, %v158_v15, 0 }
  0x76   : > { %173 = vmatpush.bf16.msra.mxu1 %v164_v20 }
  0x7c   : > { %v240_v16 = vpop.permute.xlu2 %239 }
  0x7d   : > { %v245_v18 = vsel %vm123_vm0, %v240_v16, 0 }
  0x7e   : > { %254 = vmatpush.bf16.xpose.msrb.mxu1 %v245_v18 }
  0x83   : > { %v122_v2 = vpop.permute.xlu0 %121  ;;  %v182_v4 = vpop.permute.xlu1 %181 }
  0x84   : > { %v128_v3 = vsel %vm123_vm0, %v122_v2, 0  ;;  %v187_v5 = vsel %vm123_vm0, %v182_v4, 0  ;;  %v298_v17 = vpop.permute.xlu2 %297 }
  0x85   : > { %137 = vmatpush.bf16.xpose.msra.mxu0 %v128_v3  ;;  %196 = vmatpush.bf16.xpose.msra.mxu2 %v187_v5  ;;  %v303_v19 = vsel %vm123_vm0, %v298_v17, 0 }
  0x8c   : > { %432 = vmatmul.msk.bf16.vlgmr.msra.gmra.mxu0 %vm123_vm0, %v528_v1  ;;  %434 = vmatmul.msk.bf16.vlgmr.msra.gmra.mxu2 %vm123_vm0, %v180_v6  ;;  %v238_v21 = vpop.permute.xlu2 %237 }
  0x8d   : > { %312 = vmatpush.bf16.xpose.msrb.mxu0 %v303_v19 }
  0x94   : > { %v296_v23 = vpop.permute.xlu2 %295 }
  0x9c   : > { %438 = vmatmul.msk.bf16.vlgmr.msrb.gmra.mxu0 %vm123_vm0, %v296_v23 }
 0x109   : > { %v139_v10 = vpop.f32.mrf.mxu0 }
 0x10a   : > { %v143_v11 = vmul.f32 0.35355338, %v139_v10 }
 0x10c   : > { %v144_v12 = vsel %vm118_vm1, -1e+30, %v143_v11 }
 0x10d   : > { %v145_v13 = vsel %vm123_vm0, %v144_v12, -inf }
 0x10e   : > { %146 = vmax.xlane.f32.xlu0 %v145_v13 }
 0x10f   : > { %v198_v22 = vpop.f32.mrf.mxu2 }
 0x110   : > { %v202_v24 = vmul.f32 0.35355338, %v198_v22 }
 0x111   : > { %v141_v14 = vpop.f32.mrf.mxu0 }
 0x112   : > { %v203_v25 = vsel %vm118_vm1, -1e+30, %v202_v24 }
 0x113   : > { %v204_v27 = vsel %vm123_vm0, %v203_v25, -inf }
 0x114   : > { %205 = vmax.xlane.f32.xlu2 %v204_v27 }
 0x117   : > { %v200_v30 = vpop.f32.mrf.mxu2 }
 0x119   : > { %v314_v33 = vpop.f32.mrf.mxu0 }
 0x11a   : > { %v318_v34 = vmul.f32 0.35355338, %v314_v33 }
 0x11c   : > { %v319_v35 = vsel %vm118_vm1, -1e+30, %v318_v34 }
 0x11d   : > { %v320_v37 = vsel %vm123_vm0, %v319_v35, -inf }
 0x121   : > { %v316_v38 = vpop.f32.mrf.mxu0 }
 0x181   : > { %v147_v26 = vpop.xlane.xlu0 %146 }
 0x182   : > { %v148_v28 = vsub.f32 %v144_v12, %v147_v26 }
 0x184   : > { %v149_v29 = vmul.f32 1.442695, %v148_v28 }
 0x186   : > { %464 = vpow2.f32 %v149_v29 }
 0x187   : > { %v206_v43 = vpop.xlane.xlu2 %205 }
 0x188   : > { %v207_v45 = vsub.f32 %v203_v25, %v206_v43 }
 0x18a   : > { %v208_v46 = vmul.f32 1.442695, %v207_v45 }
 0x18c   : > { %v465_v31 = vpop.eup %464 }
 0x18d   : > { %v151_v32 = vsel %vm123_vm0, %v465_v31, 0.0 }
 0x18e   : > { %152 = vadd.xlane.f32.xlu1 %v151_v32 }
 0x196   : > { %321 = vmax.xlane.f32.xlu1 %v320_v37 }
 0x1af   : > { %216 = vrot.lane.b32.xlu1 %v528_v1, %s496_s20 }
 0x1b7   : > { %332 = vrot.lane.b32.xlu1 %v528_v1, %s497_s21 }
 0x201   : > { %v153_v36 = vpop.xlane.xlu1 %152 }
 0x202   : > { %466 = vrcp.f32 %v153_v36 }
 0x203   : > { %468 = vpow2.f32 %v208_v46 }
 0x208   : > { %v467_v39 = vpop.eup %466 }
 0x209   : > { %v155_v40 = vmul.f32 %v467_v39, %v465_v31  ;;  %v322_v47 = vpop.xlane.xlu1 %321  ;;  %v469_v55 = vpop.eup %468 }
 0x20a   : > { %v323_v50 = vsub.f32 %v319_v35, %v322_v47  ;;  %v210_v56 = vsel %vm123_vm0, %v469_v55, 0.0 }
 0x20b   : > { %v156_v41 = vpack.c.bf16 %v155_v40, %v155_v40 }
 0x20c   : > { %v324_v53 = vmul.f32 1.442695, %v323_v50 }
 0x20d   : > { %433 = vmatmul.msk.bf16.vlgmr.msra.gmra.mxu1 %vm123_vm0, %v156_v41 }
 0x20e   : > { %470 = vpow2.f32 %v324_v53 }
 0x214   : > { %v471_v57 = vpop.eup %470 }
 0x215   : > { %v326_v58 = vsel %vm123_vm0, %v471_v57, 0.0 }
 0x21d   : > { %436 = vmatmul.msk.bf16.vlgmr.msrb.gmra.mxu1 %vm123_vm0, %v238_v21 }
 0x221   : > { %v217_v59 = vpop.permute.xlu1 %216 }
 0x222   : > { %v222_v60 = vsel %vm162_vm2, %v217_v59, 0 }
 0x223   : > { %231 = vmatpush.bf16.msra.mxu3 %v222_v60 }
 0x229   : > { %v333_v61 = vpop.permute.xlu1 %332 }
 0x22a   : > { %v338_v62 = vsel %vm162_vm2, %v333_v61, 0 }
 0x22b   : > { %347 = vmatpush.bf16.msrb.mxu2 %v338_v62 }
 0x28a   : > { %v564_v42 = vpop.f32.mrf.mxu1 }
 0x292   : > { %v177_v44 = vpop.f32.mrf.mxu1 }
 0x29a   : > { %v256_v48 = vpop.f32.mrf.mxu1 }
 0x29b   : > { %v260_v49 = vmul.f32 0.35355338, %v256_v48 }
 0x29d   : > { %v261_v51 = vsel %vm118_vm1, -1e+30, %v260_v49 }
 0x29e   : > { %v262_v52 = vsel %vm123_vm0, %v261_v51, -inf }
 0x29f   : > { %263 = vmax.xlane.f32.xlu0 %v262_v52 }
 0x2a2   : > { %v258_v54 = vpop.f32.mrf.mxu1 }
 0x2a7   : > { %211 = vadd.xlane.f32.xlu0 %v210_v56 }
 0x2af   : > { %327 = vadd.xlane.f32.xlu0 %v326_v58 }
 0x312   : > { %v264_v63 = vpop.xlane.xlu0 %263 }
 0x313   : > { %v265_v0 = vsub.f32 %v261_v51, %v264_v63 }
 0x315   : > { %v266_v2 = vmul.f32 1.442695, %v265_v0 }
 0x317   : > { %472 = vpow2.f32 %v266_v2 }
 0x31a   : > { %v212_v3 = vpop.xlane.xlu0 %211 }
 0x31b   : > { %474 = vrcp.f32 %v212_v3 }
 0x31d   : > { %v473_v4 = vpop.eup %472 }
 0x31e   : > { %v268_v5 = vsel %vm123_vm0, %v473_v4, 0.0 }
 0x31f   : > { %269 = vadd.xlane.f32.xlu0 %v268_v5 }
 0x321   : > { %v475_v6 = vpop.eup %474 }
 0x322   : > { %v328_v7 = vpop.xlane.xlu0 %327  ;;  %v214_v8 = vmul.f32 %v475_v6, %v469_v55 }
 0x323   : > { %476 = vrcp.f32 %v328_v7 }
 0x324   : > { %v215_v9 = vpack.c.bf16 %v214_v8, %v214_v8 }
 0x326   : > { %435 = vmatmul.msk.bf16.vlgmr.msra.gmra.mxu3 %vm123_vm0, %v215_v9 }
 0x329   : > { %v477_v10 = vpop.eup %476 }
 0x32a   : > { %v330_v11 = vmul.f32 %v477_v10, %v471_v57 }
 0x32c   : > { %v331_v12 = vpack.c.bf16 %v330_v11, %v330_v11 }
 0x32e   : > { %439 = vmatmul.msk.bf16.vlgmr.msrb.gmra.mxu2 %vm123_vm0, %v331_v12 }
 0x333   : > { %274 = vrot.lane.b32.xlu0 %v528_v1, %s498_s22 }
 0x392   : > { %v270_v13 = vpop.xlane.xlu0 %269 }
 0x393   : > { %478 = vrcp.f32 %v270_v13 }
 0x399   : > { %v479_v14 = vpop.eup %478 }
 0x39a   : > { %v272_v15 = vmul.f32 %v479_v14, %v473_v4 }
 0x39c   : > { %v273_v18 = vpack.c.bf16 %v272_v15, %v272_v15 }
 0x3a5   : > { %v275_v16 = vpop.permute.xlu0 %274 }
 0x3a6   : > { %v280_v17 = vsel %vm162_vm2, %v275_v16, 0 }
 0x3a7   : > { %289 = vmatpush.bf16.msrb.mxu3 %v280_v17 }
 0x3a9   : > { %v233_v19 = vpop.f32.mrf.mxu3 }
 0x3aa   : > { %437 = vmatmul.msk.bf16.vlgmr.msrb.gmra.mxu3 %vm123_vm0, %v273_v18  ;;  %354 = vrot.lane.b32.xlu2 %v233_v19, %s499_s23 }
 0x3b1   : > { %v235_v20 = vpop.f32.mrf.mxu3  ;;  %v349_v21 = vpop.f32.mrf.mxu2 }
 0x3b9   : > { %v351_v22 = vpop.f32.mrf.mxu2 }
 0x404   : > { %v355_v25 = vpop.permute.xlu2 %354 }
 0x405   : > { %v365_v26 = vsel %vm123_vm0, %v564_v42, %v355_v25 }
 0x42d   : > { %v291_v23 = vpop.f32.mrf.mxu3 }
 0x42e   : > { %358 = vrot.lane.b32.xlu1 %v291_v23, %s500_s24 }
 0x435   : > { %v293_v1 = vpop.f32.mrf.mxu3 }
 0x436   : > { %362 = vrot.lane.b32.xlu1 %v349_v21, %s501_s25 }
 0x4a0   : > { %v359_v24 = vpop.permute.xlu1 %358 }
 0x4a1   : > { %v367_v27 = vsel %vm366_vm3, %v365_v26, %v359_v24 }
 0x4a8   : > { %v363_v28 = vpop.permute.xlu1 %362 }
 0x4a9   : > { %v369_v29 = vsel %vm368_vm4, %v367_v27, %v363_v28 }
 0x4aa   : > { %371 = vst.msk [vmem:[%s111_s28] sm:$0xff] %vm370_vm5, %v369_v29 }
 0x4ab PF: > { %s11_s6 = sadd.s32 1, %s486_s6  }
 0x4ac   : > { %p8_p4 = scmp.ge.s32.totalorder %s11_s6, 4  }
 0x4ae   :  { %10 = sbr.rel (!%p8_p4) target bundleno = 1 (0x1), region = 54 }

// kernel: seq2seq_forward.35
= control target key start
LH: loop header
LB: loop body
LE: loop exit
PB: predicated region body
PF: predicated region fallthrough
CT: control target
= control target key end

     0   :  { %s198_s0 = inlined_call_operand.vmem [shape: f32[16,32], index: 0, kind: input, shape index: {}]   ;;  %s199_s1 = inlined_call_operand.vmem [shape: bf16[32,64], index: 1, kind: input, shape index: {}]   ;;  %s200_s2 = inlined_call_operand.vmem [shape: f32[1,64], index: 2, kind: input, shape index: {}]   ;;  %s201_s3 = inlined_call_operand.hbm [shape: f32[16,64], index: 3, kind: output, shape index: {}]  }
   0x1   :  { %v112_v0 = vld [vmem:[%s199_s1 + $0x8] sm:$0xff]  ;;  %v111_v1 = vld [vmem:[%s199_s1] sm:$0xff] }
   0x2   :  { %49 = vmatpush.bf16.msra.mxu0 %v112_v0  ;;  %v16_v2 = vld [vmem:[%s198_s0] sm:$0xff]  ;;  %v17_v3 = vld [vmem:[%s198_s0 + $0x8] sm:$0xff] }
   0x3   :  { %8 = vsyncpa [#allocation3], 0  ;;  %v18_v4 = vpack.c.bf16 %v17_v3, %v16_v2  ;;  %vm39_vm0 = vcmask 261120   ;;  %v116_v5 = vld [vmem:[%s200_s2] ss:$0 sm:$0xff]  ;;  %vm57_vm1 = vcmask 523264  }
   0x4   :  { %s151_s0 = smov [#allocation2]   ;;  %s90_s23 = sshll.u32 %s201_s3, 4  ;;  %s91_s23 = int_to_ptr.hbm [resolvable:$true] %s90_s23 }
   0x5   :  { %s88_s1 = sshll.u32 %s151_s0, 4  ;;  %s152_s24 = smov 128   ;;  %s89_s1 = int_to_ptr.vmem [resolvable:$true] %s88_s1 }
   0x6   :  { %50 = vmatpush.bf16.msra.mxu0 %v111_v1  ;;  %s153_s25 = smov 8  }
   0x9   :  { %110 = vmatmul.msk.bf16.vlgmr.msra.gmra.mxu0 %vm39_vm0, %v18_v4 }
  0x86   :  { %v52_v6 = vpop.f32.mrf.mxu0 }
  0x87   :  { %v53_v7 = vadd.f32 %v116_v5, %v52_v6 }
  0x89   :  { %v58_v8 = vsel %vm57_vm1, %v53_v7, -inf }
  0x8a   :  { %59 = vmax.xlane.f32.xlu0 %v58_v8 }
  0x8e   :  { %v54_v9 = vpop.f32.mrf.mxu0 }
  0x8f   :  { %v55_v10 = vadd.f32 %v116_v5, %v54_v9 }
  0x91   :  { %v61_v11 = vsel %vm57_vm1, %v55_v10, -inf }
  0x92   :  { %62 = vmax.xlane.f32.xlu0 %v61_v11 }
  0xfd   :  { %v60_v12 = vpop.xlane.xlu0 %59 }
  0xfe   :  { %v64_v13 = vsub.f32 %v53_v7, %v60_v12 }
 0x100   :  { %v66_v14 = vmul.f32 1.442695, %v64_v13 }
 0x102   :  { %117 = vpow2.f32 %v66_v14 }
 0x105   :  { %v63_v15 = vpop.xlane.xlu0 %62 }
 0x106   :  { %v65_v16 = vsub.f32 %v55_v10, %v63_v15 }
 0x108   :  { %v118_v17 = vpop.eup %117  ;;  %v68_v18 = vmul.f32 1.442695, %v65_v16 }
 0x109   :  { %v70_v19 = vsel %vm57_vm1, %v118_v17, 0.0 }
 0x10a   :  { %119 = vpow2.f32 %v68_v18  ;;  %71 = vadd.xlane.f32.xlu1 %v70_v19 }
 0x110   :  { %v120_v20 = vpop.eup %119 }
 0x111   :  { %v73_v21 = vsel %vm57_vm1, %v120_v20, 0.0 }
 0x112   :  { %74 = vadd.xlane.f32.xlu1 %v73_v21 }
 0x17d   :  { %v72_v22 = vpop.xlane.xlu1 %71 }
 0x17e   :  { %121 = vlog2.f32 %v72_v22 }
 0x184   :  { %v122_v23 = vpop.eup %121 }
 0x185   :  { %v77_v24 = vmul.f32 0.6931472, %v122_v23  ;;  %v75_v25 = vpop.xlane.xlu1 %74 }
 0x186   :  { %123 = vlog2.f32 %v75_v25 }
 0x187   :  { %v80_v26 = vsub.f32 %v64_v13, %v77_v24 }
 0x189   :  { %82 = vst.msk [vmem:[#allocation2] sm:$0xff] %vm57_vm1, %v80_v26 }
 0x18c   :  { %v124_v27 = vpop.eup %123 }
 0x18d   :  { %v79_v28 = vmul.f32 0.6931472, %v124_v27 }
 0x18f   :  { %v81_v29 = vsub.f32 %v65_v16, %v79_v28 }
 0x191   :  { %83 = vst.msk [vmem:[#allocation2 + $0x8] sm:$0xff] %vm57_vm1, %v81_v29 }
 0x192   :  { %96 = dma.vmem_to_hbm [thread:$0]  %s89_s1, 256, %s91_s23, [#allocation3], %s152_s24, %s152_s24, %s153_s25  }
 0x193   :  { %149 = dma.done.wait [#allocation3], 256  }
 0x194   :  { %150 = vsyncadd [#allocation3], 4294967040 }
 0x195   :  { %101 = vsyncpa [#allocation3], 1 }

// kernel: seq2seq_forward.32
= control target key start
LH: loop header
LB: loop body
LE: loop exit
PB: predicated region body
PF: predicated region fallthrough
CT: control target
= control target key end

     0   :  { %s558_s9 = smov 0   ;;  %s621_s0 = inlined_call_operand.vmem [shape: f32[2,8,32], index: 0, kind: input, shape index: {}]   ;;  %s622_s1 = inlined_call_operand.vmem [shape: f32[2,8,64], index: 1, kind: input, shape index: {}]   ;;  %s623_s2 = inlined_call_operand.vmem [shape: f32[2,8,32], index: 2, kind: output, shape index: {}]  }
   0x1 LB: > { %s473_s10 = sadd.s32 4294967295, %s531_s9   ;;  %p477_p0 = scmp.ge.s32.totalorder %s531_s9, 1  ;;  %s531_s9 = sphi %s558_s9, %s12_s9  }
   0x2   : > { %p120_p1 = scmp.lt.s32.totalorder %s531_s9, 3 }
   0x4   : > { %p121_p2 = pnand %p477_p0, %p120_p1 }
   0x5   : > { %p144_p3 = scmp.lt.s32.totalorder (!%p121_p2), %s473_s10, 1  ;;  %s533_s18 = smov (!%p121_p2), 96  }
   0x6   : > { %124 = sbr.rel (%p121_p2) target bundleno = 1078 (0x436), region = 28  ;;  %s534_s19 = smov (!%p121_p2), 112  }
   0x7   : > { %s535_s20 = smov (!%p121_p2), 104   ;;  %s536_s21 = smov (!%p121_p2), 120  }
   0x8   : > { %s537_s22 = smov (!%p121_p2), 88   ;;  %s538_s23 = smov (!%p121_p2), 80  }
   0x9   : > { %s539_s24 = smov (!%p121_p2), 72   ;;  %s540_s25 = smov (!%p121_p2), 8  }
   0xa   : > { %s541_s26 = smov (!%p121_p2), 24   ;;  %s542_s27 = smov (!%p121_p2), 16  }
   0xb   : > { %s625_s10 = smov (!%p144_p3, %s473_s10), 1  ;;  %vm161_vm0 = vcmask 64512   ;;  %vm200_vm1 = vcmask 1043456   ;;  %vm402_vm2 = vcmask 130048   ;;  %vm404_vm3 = vcmask 195584  }
   0xc   : > { %s566_s11 = sshll.u32 %s625_s10, 3  ;;  %vm406_vm4 = vcmask 261120  }
   0xd   : > { %s151_s14 = scalar_lea.vmem %s622_s1, %s566_s11  ;;  %s147_s17 = scalar_lea.vmem %s621_s0, %s566_s11 }
   0xe   : > { %v158_v0 = vld [vmem:[%s151_s14] sm:$0xff]  ;;  %s155_s30 = scalar_lea.vmem %s623_s2, %s566_s11 }
   0xf   : > { %v572_v1 = vpack.c.bf16 %v158_v0, %v158_v0  ;;  %v157_v3 = vld [vmem:[%s147_s17] sm:$0xff] }
  0x10   : > { %v159_v4 = vpack.c.bf16 %v157_v3, %v157_v3 }
  0x11   : > { %v166_v2 = vsel %vm161_vm0, %v572_v1, 0  ;;  %195 = vrot.lane.b32.xlu2 %v572_v1, %s533_s18 }
  0x12   : > { %175 = vmatpush.bf16.xpose.msra.mxu0 %v166_v2 }
  0x19   : > { %481 = vmatmul.msk.bf16.vlgmr.msra.gmra.mxu0 %vm161_vm0, %v159_v4  ;;  %277 = vrot.lane.b32.xlu2 %v572_v1, %s534_s19 }
  0x21   : > { %334 = vrot.lane.b32.xlu2 %v572_v1, %s535_s20 }
  0x29   : > { %275 = vrot.lane.b32.xlu2 %v159_v4, %s534_s19 }
  0x6b   : > { %v196_v9 = vpop.permute.xlu2 %195 }
  0x6c   : > { %v202_v20 = vsel %vm200_vm1, %v196_v9, 0 }
  0x6d   : > { %211 = vmatpush.bf16.msra.mxu1 %v202_v20 }
  0x73   : > { %v278_v10 = vpop.permute.xlu2 %277 }
  0x74   : > { %v283_v21 = vsel %vm161_vm0, %v278_v10, 0 }
  0x75   : > { %292 = vmatpush.bf16.xpose.msrb.mxu1 %v283_v21 }
  0x7b   : > { %v335_v14 = vpop.permute.xlu2 %334 }
  0x7c   : > { %v340_v15 = vsel %vm161_vm0, %v335_v14, 0 }
  0x7d   : > { %349 = vmatpush.bf16.xpose.msrb.mxu0 %v340_v15 }
  0x83   : > { %v276_v28 = vpop.permute.xlu2 %275 }
  0x96   : > { %v177_v5 = vpop.f32.mrf.mxu0 }
  0x97   : > { %v181_v6 = vmul.f32 0.35355338, %v177_v5 }
  0x99   : > { %v182_v7 = vsel %vm161_vm0, %v181_v6, -inf }
  0x9a   : > { %183 = vmax.xlane.f32.xlu0 %v182_v7 }
  0x9e   : > { %v179_v8 = vpop.f32.mrf.mxu0 }
  0xae   : > { %220 = vrot.lane.b32.xlu0 %v572_v1, %s536_s21 }
  0xb6   : > { %332 = vrot.lane.b32.xlu0 %v159_v4, %s535_s20 }
 0x10d   : > { %v184_v11 = vpop.xlane.xlu0 %183 }
 0x10e   : > { %v185_v12 = vsub.f32 %v181_v6, %v184_v11 }
 0x110   : > { %v186_v13 = vmul.f32 1.442695, %v185_v12 }
 0x112   : > { %509 = vpow2.f32 %v186_v13 }
 0x118   : > { %v510_v16 = vpop.eup %509 }
 0x119   : > { %v188_v17 = vsel %vm161_vm0, %v510_v16, 0.0 }
 0x11a   : > { %189 = vadd.xlane.f32.xlu1 %v188_v17 }
 0x120   : > { %v221_v18 = vpop.permute.xlu0 %220 }
 0x121   : > { %v226_v22 = vsel %vm161_vm0, %v221_v18, 0 }
 0x122   : > { %235 = vmatpush.bf16.xpose.msra.mxu2 %v226_v22 }
 0x128   : > { %v333_v19 = vpop.permute.xlu0 %332 }
 0x129   : > { %487 = vmatmul.msk.bf16.vlgmr.msrb.gmra.mxu0 %vm161_vm0, %v333_v19 }
 0x133   : > { %218 = vrot.lane.b32.xlu1 %v159_v4, %s536_s21 }
 0x18d   : > { %v190_v23 = vpop.xlane.xlu1 %189 }
 0x18e   : > { %511 = vrcp.f32 %v190_v23 }
 0x194   : > { %v512_v24 = vpop.eup %511 }
 0x195   : > { %v192_v25 = vmul.f32 %v512_v24, %v510_v16 }
 0x197   : > { %v193_v26 = vpack.c.bf16 %v192_v25, %v192_v25 }
 0x199   : > { %482 = vmatmul.msk.bf16.vlgmr.msra.gmra.mxu1 %vm161_vm0, %v193_v26 }
 0x1a5   : > { %v219_v27 = vpop.permute.xlu1 %218 }
 0x1a6   : > { %483 = vmatmul.msk.bf16.vlgmr.msra.gmra.mxu2 %vm161_vm0, %v219_v27  ;;  %v351_v29 = vpop.f32.mrf.mxu0 }
 0x1a7   : > { %v355_v30 = vmul.f32 0.35355338, %v351_v29 }
 0x1a9   : > { %485 = vmatmul.msk.bf16.vlgmr.msrb.gmra.mxu1 %vm161_vm0, %v276_v28  ;;  %v356_v31 = vsel %vm161_vm0, %v355_v30, -inf }
 0x1aa   : > { %357 = vmax.xlane.f32.xlu0 %v356_v31 }
 0x1ae   : > { %v353_v32 = vpop.f32.mrf.mxu0 }
 0x216   : > { %v596_v33 = vpop.f32.mrf.mxu1 }
 0x21d   : > { %v358_v45 = vpop.xlane.xlu0 %357 }
 0x21e   : > { %v215_v34 = vpop.f32.mrf.mxu1  ;;  %v359_v49 = vsub.f32 %v355_v30, %v358_v45 }
 0x220   : > { %v360_v51 = vmul.f32 1.442695, %v359_v49 }
 0x226   : > { %v294_v35 = vpop.f32.mrf.mxu1 }
 0x227   : > { %v298_v36 = vmul.f32 0.35355338, %v294_v35 }
 0x229   : > { %v237_v37 = vpop.f32.mrf.mxu2  ;;  %v299_v38 = vsel %vm161_vm0, %v298_v36, -inf }
 0x22a   : > { %v241_v39 = vmul.f32 0.35355338, %v237_v37  ;;  %300 = vmax.xlane.f32.xlu1 %v299_v38 }
 0x22c   : > { %v242_v40 = vsel %vm161_vm0, %v241_v39, -inf }
 0x22d   : > { %243 = vmax.xlane.f32.xlu2 %v242_v40 }
 0x22e   : > { %v296_v41 = vpop.f32.mrf.mxu1 }
 0x231   : > { %v239_v42 = vpop.f32.mrf.mxu2 }
 0x243   : > { %254 = vrot.lane.b32.xlu1 %v572_v1, %s537_s22 }
 0x29d   : > { %v301_v43 = vpop.xlane.xlu1 %300 }
 0x29e   : > { %v302_v44 = vsub.f32 %v298_v36, %v301_v43 }
 0x2a0   : > { %v303_v46 = vmul.f32 1.442695, %v302_v44  ;;  %v244_v47 = vpop.xlane.xlu2 %243 }
 0x2a1   : > { %v245_v48 = vsub.f32 %v241_v39, %v244_v47 }
 0x2a2   : > { %513 = vpow2.f32 %v303_v46 }
 0x2a3   : > { %v246_v50 = vmul.f32 1.442695, %v245_v48 }
 0x2a5   : > { %515 = vpow2.f32 %v246_v50 }
 0x2a6   : > { %517 = vpow2.f32 %v360_v51 }
 0x2a8   : > { %v514_v52 = vpop.eup %513 }
 0x2a9   : > { %v305_v53 = vsel %vm161_vm0, %v514_v52, 0.0 }
 0x2aa   : > { %306 = vadd.xlane.f32.xlu0 %v305_v53 }
 0x2ab   : > { %v516_v54 = vpop.eup %515 }
 0x2ac   : > { %v248_v55 = vsel %vm161_vm0, %v516_v54, 0.0  ;;  %v518_v56 = vpop.eup %517 }
 0x2ad   : > { %249 = vadd.xlane.f32.xlu2 %v248_v55  ;;  %v362_v57 = vsel %vm161_vm0, %v518_v56, 0.0 }
 0x2b5   : > { %363 = vadd.xlane.f32.xlu2 %v362_v57  ;;  %v255_v58 = vpop.permute.xlu1 %254 }
 0x2b6   : > { %v260_v59 = vsel %vm200_vm1, %v255_v58, 0 }
 0x2b7   : > { %269 = vmatpush.bf16.msra.mxu3 %v260_v59 }
 0x2be   : > { %311 = vrot.lane.b32.xlu0 %v572_v1, %s538_s23 }
 0x2cd   : > { %368 = vrot.lane.b32.xlu2 %v572_v1, %s539_s24 }
 0x31d   : > { %v307_v62 = vpop.xlane.xlu0 %306 }
 0x320   : > { %v250_v60 = vpop.xlane.xlu2 %249 }
 0x321   : > { %519 = vrcp.f32 %v250_v60 }
 0x327   : > { %v520_v61 = vpop.eup %519 }
 0x328   : > { %v364_v63 = vpop.xlane.xlu2 %363  ;;  %v252_v0 = vmul.f32 %v520_v61, %v516_v54 }
 0x329   : > { %521 = vrcp.f32 %v364_v63 }
 0x32a   : > { %v253_v2 = vpack.c.bf16 %v252_v0, %v252_v0  ;;  %523 = vrcp.f32 %v307_v62 }
 0x32c   : > { %484 = vmatmul.msk.bf16.vlgmr.msra.gmra.mxu3 %vm161_vm0, %v253_v2 }
 0x32f   : > { %v522_v3 = vpop.eup %521 }
 0x330   : > { %v366_v4 = vmul.f32 %v522_v3, %v518_v56  ;;  %v369_v5 = vpop.permute.xlu2 %368  ;;  %v312_v6 = vpop.permute.xlu0 %311 }
 0x331   : > { %v317_v1 = vsel %vm200_vm1, %v312_v6, 0  ;;  %v374_v7 = vsel %vm200_vm1, %v369_v5, 0  ;;  %v524_v9 = vpop.eup %523 }
 0x332   : > { %326 = vmatpush.bf16.msrb.mxu3 %v317_v1  ;;  %383 = vmatpush.bf16.msrb.mxu2 %v374_v7  ;;  %v367_v8 = vpack.c.bf16 %v366_v4, %v366_v4  ;;  %v309_v10 = vmul.f32 %v524_v9, %v514_v52 }
 0x334   : > { %v310_v11 = vpack.c.bf16 %v309_v10, %v309_v10 }
 0x335   : > { %488 = vmatmul.msk.bf16.vlgmr.msrb.gmra.mxu2 %vm161_vm0, %v367_v8 }
 0x33c   : > { %486 = vmatmul.msk.bf16.vlgmr.msrb.gmra.mxu3 %vm161_vm0, %v310_v11 }
 0x3af   : > { %v271_v12 = vpop.f32.mrf.mxu3 }
 0x3b0   : > { %390 = vrot.lane.b32.xlu1 %v271_v12, %s540_s25 }
 0x3b7   : > { %v273_v13 = vpop.f32.mrf.mxu3 }
 0x3b8   : > { %v385_v14 = vpop.f32.mrf.mxu2 }
 0x3b9   : > { %398 = vrot.lane.b32.xlu1 %v385_v14, %s541_s26 }
 0x3bf   : > { %v328_v15 = vpop.f32.mrf.mxu3 }
 0x3c0   : > { %v387_v16 = vpop.f32.mrf.mxu2  ;;  %394 = vrot.lane.b32.xlu0 %v328_v15, %s542_s27 }
 0x3c7   : > { %v330_v17 = vpop.f32.mrf.mxu3 }
 0x422   : > { %v391_v18 = vpop.permute.xlu1 %390 }
 0x423   : > { %v401_v19 = vsel %vm161_vm0, %v596_v33, %v391_v18 }
 0x42b   : > { %v399_v21 = vpop.permute.xlu1 %398 }
 0x432   : > { %v395_v20 = vpop.permute.xlu0 %394 }
 0x433   : > { %v403_v22 = vsel %vm402_vm2, %v401_v19, %v395_v20 }
 0x434   : > { %v405_v23 = vsel %vm404_vm3, %v403_v22, %v399_v21 }
 0x435   : > { %407 = vst.msk [vmem:[%s155_s30] sm:$0xff] %vm406_vm4, %v405_v23 }
 0x436 PF: > { %s12_s9 = sadd.s32 1, %s531_s9  }
 0x437   : > { %p9_p4 = scmp.ge.s32.totalorder %s12_s9, 4  }
 0x439   :  { %11 = sbr.rel (!%p9_p4) target bundleno = 1 (0x1), region = 61 }

</bundles_post_ra>
